<compile_context>
chip_gen: v6e
topology: v6e:2x2x1
jax: 0.10.0
libtpu: 0.0.40
codegen_flags: <defaults>
</compile_context>

<pallas_src>
import functools

import jax
import jax.numpy as jnp
from jax import lax
from jax.experimental import pallas as pl
from jax.experimental.pallas import tpu as pltpu


def _emd_kernel(t_ref, s_ref, cost_ref, *, eps: float, iters: int,
                use_bf16_exp: bool):
    """Batched per-cloud EMD cost (entropic-OT approximation).

    t_ref, s_ref : (Bt, C, N) VMEM tiles (lane-dense point clouds)
    cost_ref     : (Bt, 1, 1) VMEM tile  (per-cloud summed matched distance)
    """
    t = t_ref[...].astype(jnp.float32)  # (Bt, C, N)
    s = s_ref[...].astype(jnp.float32)  # (Bt, C, N)
    bt, c, n = t.shape
    n_f = jnp.float32(n)

    # ---- pairwise Euclidean distances: d[b,i,j] = |t_bi - s_bj| -------------
    # C is tiny (3): C broadcast FMAs on the VPU (no K=3 MXU matmul, no
    # relayout, d2 exactly non-negative so sqrt is safe).
    d2 = jnp.zeros((bt, n, n), jnp.float32)
    for ci in range(c):
        diff = t[:, ci, :, None] - s[:, ci, None, :]  # (Bt, N, N)
        d2 = d2 + diff * diff
    dist = jnp.sqrt(d2)

    # Scaled negative cost, hoisted out of the loop.  nd has template points i
    # on sublanes / source points j on lanes; nd_T the opposite.  Both stay
    # resident across the Sinkhorn loop so that *both* LSE reductions are
    # sublane reductions (cheap VPU work) instead of cross-lane XLU trees.
    neg_inv_eps = jnp.float32(-1.0 / eps)
    nd = dist * neg_inv_eps                          # (Bt, N, N)
    nd_t = jnp.transpose(nd, (0, 2, 1))              # (Bt, N, N), one-time XLU transpose
    log_marg = -jnp.log(n_f)                         # uniform mass 1/N per point

    def _lse_sub(x):
        # log-sum-exp over the sublane axis (axis=1).
        m = jnp.max(x, axis=1, keepdims=True)        # sublane max
        z = x - m                                    # <= 0 elementwise
        if use_bf16_exp:
            # v6e/v7x EUP runs bf16 exps ~2x faster; accumulate the sum in f32.
            e = jnp.exp(z.astype(jnp.bfloat16)).astype(jnp.float32)
        else:
            e = jnp.exp(z)
        return m + jnp.log(jnp.sum(e, axis=1, keepdims=True))

    # Log-domain Sinkhorn on eps-scaled dual potentials (phi = f/eps, g/eps).
    # Per iteration: 2 broadcast adds, 2 sublane LSEs, 2 small (1,N)->(N,1)
    # turns (tiny relayouts replacing the former full cross-lane LSE).
    def body(_, carry):
        phi_col, _ = carry                                     # (Bt,N,1), (Bt,1,N)
        gamma_lane = log_marg - _lse_sub(phi_col + nd)         # column-marginal update
        gamma_col = jnp.transpose(gamma_lane, (0, 2, 1))       # (Bt,N,1) turn
        phi_lane = log_marg - _lse_sub(gamma_col + nd_t)       # row-marginal update (last)
        phi_col = jnp.transpose(phi_lane, (0, 2, 1))           # (Bt,N,1) turn
        return (phi_col, gamma_lane)

    phi0 = jnp.zeros((bt, n, 1), jnp.float32)
    gamma0 = jnp.zeros((bt, 1, n), jnp.float32)
    # unroll=1: loop-control cost is noise vs the N^2 body; unrolling only
    # doubled live (Bt,N,N) temporaries (hurts on v7x's 64 MiB VMEM).
    phi_col, gamma_lane = lax.fori_loop(0, iters, body, (phi0, gamma0))

    # Ending on the phi-update makes every row of the transport plan sum to
    # exactly 1/N, so  N * sum_ij plan_ij * dist_ij  is the per-cloud summed
    # matched distance (what EMDLoss returns per batch element).
    # dist = -eps * nd, so the cost is fused without materializing `plan`.
    w = jnp.exp(phi_col + gamma_lane + nd) * nd      # (Bt, N, N)
    col = jnp.sum(w, axis=1, keepdims=True)          # sublane reduce -> (Bt, 1, N)
    tot = jnp.sum(col, axis=2, keepdims=True)        # one small lane reduce -> (Bt,1,1)
    cost_ref[...] = (jnp.float32(-eps) * n_f) * tot


def _tpu_tuning():
    """Per-generation knobs: (bf16 EUP exp, vmem_limit_bytes, tiling budget)."""
    kind = ""
    try:
        kind = jax.devices()[0].device_kind.lower()
    except Exception:
        pass
    is_v7 = ("v7" in kind) or ("tpu7" in kind)
    is_v6 = "v6" in kind
    is_v5 = "v5" in kind
    bf16_exp = is_v6 or is_v7               # v5e has no bf16 EUP path
    if is_v7:                               # 64 MiB physical VMEM
        return bf16_exp, 48 << 20, 18 << 20
    if is_v6 or is_v5:                      # 128 MiB physical VMEM
        return bf16_exp, 64 << 20, 32 << 20
    return False, 32 << 20, 8 << 20         # conservative default for unknown parts


def _pick_batch_tile(b: int, n: int, budget_bytes: int) -> int:
    """Largest divisor of B whose per-step working set fits the VMEM budget."""
    # ~10 live (N, N) f32 buffers per cloud: nd + nd_T resident across the
    # loop plus loop/epilogue temporaries (tightened from the old estimate of 6).
    per_cloud = 10 * n * n * 4
    bt_vmem = max(1, budget_bytes // per_cloud)
    # Keep the grid >= 2 so both TensorCores get work on v7x (the batch axis is
    # marked "parallel"); harmless on the 1-TC generations.
    bt_cap = max(1, b // 2)
    bt_max = min(bt_vmem, bt_cap)
    bt = 1
    for d in range(1, b + 1):
        if b % d == 0 and d <= bt_max:
            bt = d
    return bt


def emd_losspy(template, source, *, eps: float = 0.05, iters: int = 64,
               use_bf16_exp=None):
    """JAX/Pallas equivalent of EMDLosspy.forward(template, source)."""
    assert template.shape == source.shape, "point clouds must have same shape"
    b, n, c = template.shape

    auto_bf16, vmem_limit, budget = _tpu_tuning()
    if use_bf16_exp is None:
        use_bf16_exp = auto_bf16

    # Lane-dense layout: points along the 128-lane axis, xyz along sublanes.
    t_cn = jnp.transpose(template, (0, 2, 1)).astype(jnp.float32)  # (B, C, N)
    s_cn = jnp.transpose(source, (0, 2, 1)).astype(jnp.float32)    # (B, C, N)

    bt = _pick_batch_tile(b, n, budget)

    kernel = functools.partial(_emd_kernel, eps=eps, iters=iters,
                               use_bf16_exp=bool(use_bf16_exp))

    costs = pl.pallas_call(
        kernel,
        out_shape=jax.ShapeDtypeStruct((b, 1, 1), jnp.float32),
        grid_spec=pltpu.PrefetchScalarGridSpec(
            num_scalar_prefetch=0,
            grid=(b // bt,),
            in_specs=[
                pl.BlockSpec((bt, c, n), lambda i: (i, 0, 0)),
                pl.BlockSpec((bt, c, n), lambda i: (i, 0, 0)),
            ],
            out_specs=pl.BlockSpec((bt, 1, 1), lambda i: (i, 0, 0)),
        ),
        compiler_params=pltpu.CompilerParams(
            # "parallel" lets the runtime shard the (>= 2 step) batch axis
            # across the two TensorCores on v7x.
            # TODO(synk): if a trace shows the axis not sharding on v7x, switch
            # this axis to pltpu.CORE_PARALLEL or an explicit core_map split.
            dimension_semantics=("parallel",),
            vmem_limit_bytes=vmem_limit,
        ),
    )(t_cn, s_cn)

    # emd(): mean over batch of per-cloud cost, divided by template.size(1) = N.
    return jnp.mean(costs[:, 0, 0]) / jnp.float32(n)


if __name__ == "__main__":
    key = jax.random.PRNGKey(0)
    k_t, k_s = jax.random.split(key)

    B, N, C = 2, 128, 3  # small point clouds: (batch, num_points, xyz)
    template = jax.random.normal(k_t, (B, N, C), dtype=jnp.float32)
    source = jax.random.normal(k_s, (B, N, C), dtype=jnp.float32)

    loss = jax.block_until_ready(emd_losspy(template, source))

    assert loss.shape == () and bool(jnp.isfinite(loss)) and float(loss) >= 0.0
    print("KERNEL_OK")
</pallas_src>

<mosaic_0001>
module attributes {stable_mosaic.version = 11 : i64} {
  func.func @_emd_kernel(%arg0: i32, %arg1: memref<1x3x128xf32, #tpu.memory_space<vmem>>, %arg2: memref<1x3x128xf32, #tpu.memory_space<vmem>>, %arg3: memref<1x1x1xf32, #tpu.memory_space<vmem>>) attributes {dimension_semantics = [#tpu.dimension_semantics<parallel>], iteration_bounds = array<i64: 2>, scalar_prefetch = 0 : i64, scratch_operands = 0 : i64, tpu.core_type = #tpu.core_type<tc>, window_params = [{transform_indices = @transform_0, window_bounds = array<i64: 1, 3, 128>}, {transform_indices = @transform_1, window_bounds = array<i64: 1, 3, 128>}, {transform_indices = @transform_2, window_bounds = array<i64: 1, 1, 1>}]} {
    %c0 = arith.constant 0 : index
    %c0_0 = arith.constant 0 : index
    %c0_1 = arith.constant 0 : index
    %0 = vector.load %arg1[%c0, %c0_0, %c0_1] : memref<1x3x128xf32, #tpu.memory_space<vmem>>, vector<1x3x128xf32>
    %c0_2 = arith.constant 0 : index
    %c0_3 = arith.constant 0 : index
    %c0_4 = arith.constant 0 : index
    %1 = vector.load %arg2[%c0_2, %c0_3, %c0_4] : memref<1x3x128xf32, #tpu.memory_space<vmem>>, vector<1x3x128xf32>
    %cst = arith.constant 0.000000e+00 : f32
    %2 = vector.broadcast %cst : f32 to vector<1x128x128xf32>
    %3 = vector.extract_strided_slice %0 {offsets = [0, 0, 0], sizes = [1, 1, 128], strides = [1, 1, 1]} : vector<1x3x128xf32> to vector<1x1x128xf32>
    %4 = vector.shape_cast %3 : vector<1x1x128xf32> to vector<1x128xf32>
    %5 = vector.shape_cast %4 : vector<1x128xf32> to vector<1x128x1xf32>
    %6 = vector.extract_strided_slice %1 {offsets = [0, 0, 0], sizes = [1, 1, 128], strides = [1, 1, 1]} : vector<1x3x128xf32> to vector<1x1x128xf32>
    %7 = vector.shape_cast %6 : vector<1x1x128xf32> to vector<1x128xf32>
    %8 = vector.shape_cast %7 : vector<1x128xf32> to vector<1x1x128xf32>
    %9 = vector.broadcast %5 : vector<1x128x1xf32> to vector<1x128x128xf32>
    %10 = vector.broadcast %8 : vector<1x1x128xf32> to vector<1x128x128xf32>
    %11 = arith.subf %9, %10 : vector<1x128x128xf32>
    %12 = arith.mulf %11, %11 : vector<1x128x128xf32>
    %13 = arith.addf %2, %12 : vector<1x128x128xf32>
    %14 = vector.extract_strided_slice %0 {offsets = [0, 1, 0], sizes = [1, 1, 128], strides = [1, 1, 1]} : vector<1x3x128xf32> to vector<1x1x128xf32>
    %15 = vector.shape_cast %14 : vector<1x1x128xf32> to vector<1x128xf32>
    %16 = vector.shape_cast %15 : vector<1x128xf32> to vector<1x128x1xf32>
    %17 = vector.extract_strided_slice %1 {offsets = [0, 1, 0], sizes = [1, 1, 128], strides = [1, 1, 1]} : vector<1x3x128xf32> to vector<1x1x128xf32>
    %18 = vector.shape_cast %17 : vector<1x1x128xf32> to vector<1x128xf32>
    %19 = vector.shape_cast %18 : vector<1x128xf32> to vector<1x1x128xf32>
    %20 = vector.broadcast %16 : vector<1x128x1xf32> to vector<1x128x128xf32>
    %21 = vector.broadcast %19 : vector<1x1x128xf32> to vector<1x128x128xf32>
    %22 = arith.subf %20, %21 : vector<1x128x128xf32>
    %23 = arith.mulf %22, %22 : vector<1x128x128xf32>
    %24 = arith.addf %13, %23 : vector<1x128x128xf32>
    %25 = vector.extract_strided_slice %0 {offsets = [0, 2, 0], sizes = [1, 1, 128], strides = [1, 1, 1]} : vector<1x3x128xf32> to vector<1x1x128xf32>
    %26 = vector.shape_cast %25 : vector<1x1x128xf32> to vector<1x128xf32>
    %27 = vector.shape_cast %26 : vector<1x128xf32> to vector<1x128x1xf32>
    %28 = vector.extract_strided_slice %1 {offsets = [0, 2, 0], sizes = [1, 1, 128], strides = [1, 1, 1]} : vector<1x3x128xf32> to vector<1x1x128xf32>
    %29 = vector.shape_cast %28 : vector<1x1x128xf32> to vector<1x128xf32>
    %30 = vector.shape_cast %29 : vector<1x128xf32> to vector<1x1x128xf32>
    %31 = vector.broadcast %27 : vector<1x128x1xf32> to vector<1x128x128xf32>
    %32 = vector.broadcast %30 : vector<1x1x128xf32> to vector<1x128x128xf32>
    %33 = arith.subf %31, %32 : vector<1x128x128xf32>
    %34 = arith.mulf %33, %33 : vector<1x128x128xf32>
    %35 = arith.addf %24, %34 : vector<1x128x128xf32>
    %36 = math.sqrt %35 : vector<1x128x128xf32>
    %cst_5 = arith.constant -2.000000e+01 : f32
    %37 = vector.broadcast %cst_5 : f32 to vector<1x128x128xf32>
    %38 = arith.mulf %36, %37 : vector<1x128x128xf32>
    %39 = tpu.transpose %38, [0, 2, 1] : vector<1x128x128xf32> -> vector<1x128x128xf32>
    %cst_6 = arith.constant 1.280000e+02 : f32
    %40 = math.log %cst_6 : f32
    %cst_7 = arith.constant 0.000000e+00 : f32
    %41 = arith.subf %cst_7, %40 : f32
    %cst_8 = arith.constant 0.000000e+00 : f32
    %42 = vector.broadcast %cst_8 : f32 to vector<1x128x1xf32>
    %cst_9 = arith.constant 0.000000e+00 : f32
    %43 = vector.broadcast %cst_9 : f32 to vector<1x1x128xf32>
    %c0_i32 = arith.constant 0 : i32
    %c64_i32 = arith.constant 64 : i32
    %44 = arith.addi %c0_i32, %c64_i32 : i32
    %c1_i32 = arith.constant 1 : i32
    %45:2 = scf.for %arg4 = %c0_i32 to %44 step %c1_i32 iter_args(%arg5 = %42, %arg6 = %43) -> (vector<1x128x1xf32>, vector<1x1x128xf32>)  : i32 {
      %60 = vector.broadcast %arg5 : vector<1x128x1xf32> to vector<1x128x128xf32>
      %61 = arith.addf %60, %38 : vector<1x128x128xf32>
      %cst_17 = arith.constant dense<0xFF800000> : vector<1x128xf32>
      %62 = vector.multi_reduction <maximumf>, %61, %cst_17 [1] : vector<1x128x128xf32> to vector<1x128xf32>
      %63 = vector.shape_cast %62 : vector<1x128xf32> to vector<1x1x128xf32>
      %64 = vector.broadcast %63 : vector<1x1x128xf32> to vector<1x128x128xf32>
      %65 = arith.subf %61, %64 : vector<1x128x128xf32>
      %66 = math.exp %65 : vector<1x128x128xf32>
      %cst_18 = arith.constant dense<0.000000e+00> : vector<1x128xf32>
      %67 = vector.multi_reduction <add>, %66, %cst_18 [1] : vector<1x128x128xf32> to vector<1x128xf32>
      %68 = vector.shape_cast %67 : vector<1x128xf32> to vector<1x1x128xf32>
      %69 = math.log %68 : vector<1x1x128xf32>
      %70 = arith.addf %63, %69 : vector<1x1x128xf32>
      %71 = vector.broadcast %41 : f32 to vector<1x1x128xf32>
      %72 = arith.subf %71, %70 : vector<1x1x128xf32>
      %73 = tpu.transpose %72, [0, 2, 1] : vector<1x1x128xf32> -> vector<1x128x1xf32>
      %74 = vector.broadcast %73 : vector<1x128x1xf32> to vector<1x128x128xf32>
      %75 = arith.addf %74, %39 : vector<1x128x128xf32>
      %cst_19 = arith.constant dense<0xFF800000> : vector<1x128xf32>
      %76 = vector.multi_reduction <maximumf>, %75, %cst_19 [1] : vector<1x128x128xf32> to vector<1x128xf32>
      %77 = vector.shape_cast %76 : vector<1x128xf32> to vector<1x1x128xf32>
      %78 = vector.broadcast %77 : vector<1x1x128xf32> to vector<1x128x128xf32>
      %79 = arith.subf %75, %78 : vector<1x128x128xf32>
      %80 = math.exp %79 : vector<1x128x128xf32>
      %cst_20 = arith.constant dense<0.000000e+00> : vector<1x128xf32>
      %81 = vector.multi_reduction <add>, %80, %cst_20 [1] : vector<1x128x128xf32> to vector<1x128xf32>
      %82 = vector.shape_cast %81 : vector<1x128xf32> to vector<1x1x128xf32>
      %83 = math.log %82 : vector<1x1x128xf32>
      %84 = arith.addf %77, %83 : vector<1x1x128xf32>
      %85 = vector.broadcast %41 : f32 to vector<1x1x128xf32>
      %86 = arith.subf %85, %84 : vector<1x1x128xf32>
      %87 = tpu.transpose %86, [0, 2, 1] : vector<1x1x128xf32> -> vector<1x128x1xf32>
      scf.yield %87, %72 : vector<1x128x1xf32>, vector<1x1x128xf32>
    }
    %46 = vector.broadcast %45#0 : vector<1x128x1xf32> to vector<1x128x128xf32>
    %47 = vector.broadcast %45#1 : vector<1x1x128xf32> to vector<1x128x128xf32>
    %48 = arith.addf %46, %47 : vector<1x128x128xf32>
    %49 = arith.addf %48, %38 : vector<1x128x128xf32>
    %50 = math.exp %49 : vector<1x128x128xf32>
    %51 = arith.mulf %50, %38 : vector<1x128x128xf32>
    %cst_10 = arith.constant dense<0.000000e+00> : vector<1x128xf32>
    %52 = vector.multi_reduction <add>, %51, %cst_10 [1] : vector<1x128x128xf32> to vector<1x128xf32>
    %53 = vector.shape_cast %52 : vector<1x128xf32> to vector<1x1x128xf32>
    %cst_11 = arith.constant dense<0.000000e+00> : vector<1x1xf32>
    %54 = vector.multi_reduction <add>, %53, %cst_11 [2] : vector<1x1x128xf32> to vector<1x1xf32>
    %55 = vector.shape_cast %54 : vector<1x1xf32> to vector<1x1x1xf32>
    %cst_12 = arith.constant -5.000000e-02 : f32
    %cst_13 = arith.constant 1.280000e+02 : f32
    %56 = arith.mulf %cst_12, %cst_13 : f32
    %57 = vector.broadcast %56 : f32 to vector<1x1x1xf32>
    %58 = arith.mulf %57, %55 : vector<1x1x1xf32>
    %c0_14 = arith.constant 0 : index
    %c0_15 = arith.constant 0 : index
    %c0_16 = arith.constant 0 : index
    %59 = vector.load %arg3[%c0_14, %c0_15, %c0_16] : memref<1x1x1xf32, #tpu.memory_space<vmem>>, vector<1x1x1xf32>
    tpu.vector_store %arg3[%c0_14, %c0_15, %c0_16], %58 {strides = array<i32>} : memref<1x1x1xf32, #tpu.memory_space<vmem>>, vector<1x1x1xf32>,
    return
  }
  func.func @transform_0(%arg0: i32) -> (i32, i32, i32) {
    %c0_i32 = arith.constant 0 : i32
    %c0_i32_0 = arith.constant 0 : i32
    %c0_i32_1 = arith.constant 0 : i32
    return %arg0, %c0_i32, %c0_i32_0 : i32, i32, i32
  }
  func.func @transform_1(%arg0: i32) -> (i32, i32, i32) {
    %c0_i32 = arith.constant 0 : i32
    %c0_i32_0 = arith.constant 0 : i32
    %c0_i32_1 = arith.constant 0 : i32
    return %arg0, %c0_i32, %c0_i32_0 : i32, i32, i32
  }
  func.func @transform_2(%arg0: i32) -> (i32, i32, i32) {
    %c0_i32 = arith.constant 0 : i32
    %c0_i32_0 = arith.constant 0 : i32
    %c0_i32_1 = arith.constant 0 : i32
    return %arg0, %c0_i32, %c0_i32_0 : i32, i32, i32
  }
}

</mosaic_0001>

<bundles_post_ra>
// kernel: tpu_custom_call.1
= control target key start
LH: loop header
LB: loop body
LE: loop exit
PB: predicated region body
PF: predicated region fallthrough
CT: control target
= control target key end

     0   :  { %s1894_s9 = smov 0   ;;  %s2404_s0 = inlined_call_operand.vmem [shape: f32[2,3,128], index: 0, kind: input, shape index: {}]   ;;  %s2405_s1 = inlined_call_operand.vmem [shape: f32[2,3,128], index: 1, kind: input, shape index: {}]   ;;  %s2406_s2 = inlined_call_operand.vmem [shape: f32[2,1,1], index: 2, kind: output, shape index: {}]  }
   0x1 LB: > { %s1441_s10 = sadd.s32 4294967295, %s1807_s9   ;;  %p1445_p0 = scmp.ge.s32.totalorder %s1807_s9, 1  ;;  %s1807_s9 = sphi %s1894_s9, %s12_s9  }
   0x2   : > { %p120_p1 = scmp.lt.s32.totalorder %s1807_s9, 3 }
   0x4   : > { %p121_p2 = pnand %p1445_p0, %p120_p1 }
   0x6   : > { %124 = sbr.rel (%p121_p2) target bundleno = 1533 (0x5fd), region = 28 }
   0xb   : > { %p143_p3 = scmp.lt.s32.totalorder %s1441_s10, 1  ;;  %v156_v0 = vlaneseq  ;;  %s2161_s21 = smov 0  }
   0xd   : > { %s2442_s10 = smov (!%p143_p3, %s1441_s10), 1  ;;  %v157_v1 = vshrl.u32 %v156_v0, 7 }
   0xe   : > { %s1446_s11 = sshll.u32 %s2442_s10, 2  ;;  %s153_s14 = scalar_lea.vmem %s2406_s2, %s2442_s10 }
   0xf   : > { %v158_v2 = vsub.s32 0, %v157_v1  ;;  %s146_s17 = scalar_lea.vmem %s2404_s0, %s1446_s11  ;;  %v277_v3 = vsub.s32 1, %v157_v1  ;;  %s150_s20 = scalar_lea.vmem %s2405_s1, %s1446_s11  ;;  %v396_v5 = vsub.s32 2, %v157_v1 }
  0x10   : > { %v154_v4 = vld [vmem:[%s146_s17] sm:$0x7] }
  0x11   : > { %v155_v6 = vld [vmem:[%s150_s20] sm:$0x7]  ;;  %v159_v7 = vrot.slane %v154_v4, %v158_v2  ;;  %v278_v11 = vrot.slane %v154_v4, %v277_v3  ;;  %v397_v12 = vrot.slane %v154_v4, %v396_v5 }
  0x12   : > { %v1915_v8 = vrot.slane %v155_v6, %v158_v2  ;;  %v1917_v9 = vrot.slane %v155_v6, %v277_v3  ;;  %v1919_v10 = vrot.slane %v155_v6, %v396_v5 }
  0x13   : > { %165 = vbcast.lane.b32.xlu1 %v159_v7, 264  ;;  %161 = vbcast.lane.b32.xlu0 %v159_v7, 256 }
  0x17   : > { %284 = vbcast.lane.b32.xlu1 %v278_v11, 264  ;;  %280 = vbcast.lane.b32.xlu0 %v278_v11, 256 }
  0x1b   : > { %169 = vbcast.lane.b32.xlu1 %v159_v7, 272  ;;  %399 = vbcast.lane.b32.xlu0 %v397_v12, 256 }
  0x1f   : > { %403 = vbcast.lane.b32.xlu1 %v397_v12, 264  ;;  %288 = vbcast.lane.b32.xlu0 %v278_v11, 272 }
  0x23   : > { %292 = vbcast.lane.b32.xlu1 %v278_v11, 280  ;;  %173 = vbcast.lane.b32.xlu0 %v159_v7, 280 }
  0x27   : > { %177 = vbcast.lane.b32.xlu1 %v159_v7, 288  ;;  %407 = vbcast.lane.b32.xlu0 %v397_v12, 272 }
  0x2b   : > { %411 = vbcast.lane.b32.xlu1 %v397_v12, 280  ;;  %296 = vbcast.lane.b32.xlu0 %v278_v11, 288 }
  0x2f   : > { %300 = vbcast.lane.b32.xlu1 %v278_v11, 296  ;;  %181 = vbcast.lane.b32.xlu0 %v159_v7, 296 }
  0x33   : > { %185 = vbcast.lane.b32.xlu1 %v159_v7, 304  ;;  %415 = vbcast.lane.b32.xlu0 %v397_v12, 288 }
  0x37   : > { %419 = vbcast.lane.b32.xlu1 %v397_v12, 296  ;;  %304 = vbcast.lane.b32.xlu0 %v278_v11, 304 }
  0x3b   : > { %308 = vbcast.lane.b32.xlu1 %v278_v11, 312  ;;  %189 = vbcast.lane.b32.xlu0 %v159_v7, 312 }
  0x3f   : > { %193 = vbcast.lane.b32.xlu1 %v159_v7, 320  ;;  %423 = vbcast.lane.b32.xlu0 %v397_v12, 304 }
  0x43   : > { %427 = vbcast.lane.b32.xlu1 %v397_v12, 312  ;;  %312 = vbcast.lane.b32.xlu0 %v278_v11, 320 }
  0x47   : > { %316 = vbcast.lane.b32.xlu1 %v278_v11, 328  ;;  %197 = vbcast.lane.b32.xlu0 %v159_v7, 328 }
  0x4b   : > { %201 = vbcast.lane.b32.xlu1 %v159_v7, 336  ;;  %431 = vbcast.lane.b32.xlu0 %v397_v12, 320 }
  0x4f   : > { %435 = vbcast.lane.b32.xlu1 %v397_v12, 328  ;;  %320 = vbcast.lane.b32.xlu0 %v278_v11, 336 }
  0x53   : > { %324 = vbcast.lane.b32.xlu1 %v278_v11, 344  ;;  %205 = vbcast.lane.b32.xlu0 %v159_v7, 344 }
  0x57   : > { %209 = vbcast.lane.b32.xlu1 %v159_v7, 352  ;;  %439 = vbcast.lane.b32.xlu0 %v397_v12, 336 }
  0x5b   : > { %443 = vbcast.lane.b32.xlu1 %v397_v12, 344  ;;  %328 = vbcast.lane.b32.xlu0 %v278_v11, 352 }
  0x5f   : > { %332 = vbcast.lane.b32.xlu1 %v278_v11, 360  ;;  %213 = vbcast.lane.b32.xlu0 %v159_v7, 360 }
  0x63   : > { %217 = vbcast.lane.b32.xlu1 %v159_v7, 368  ;;  %447 = vbcast.lane.b32.xlu0 %v397_v12, 352 }
  0x67   : > { %451 = vbcast.lane.b32.xlu1 %v397_v12, 360  ;;  %336 = vbcast.lane.b32.xlu0 %v278_v11, 368 }
  0x6b   : > { %340 = vbcast.lane.b32.xlu1 %v278_v11, 376  ;;  %221 = vbcast.lane.b32.xlu0 %v159_v7, 376 }
  0x6f   : > { %459 = vbcast.lane.b32.xlu1 %v397_v12, 376  ;;  %455 = vbcast.lane.b32.xlu0 %v397_v12, 368 }
  0x85   : > { %v166_v13 = vpop.permute.xlu1 %165  ;;  %v162_v14 = vpop.permute.xlu0 %161 }
  0x86   : > { %v227_v17 = vsub.f32 %v162_v14, %v1915_v8  ;;  %v228_v19 = vsub.f32 %v166_v13, %v1915_v8 }
  0x88   : > { %v243_v24 = vmul.f32 %v227_v17, %v227_v17  ;;  %v244_v26 = vmul.f32 %v228_v19, %v228_v19 }
  0x89   : > { %v285_v15 = vpop.permute.xlu1 %284  ;;  %v281_v16 = vpop.permute.xlu0 %280 }
  0x8a   : > { %v346_v18 = vsub.f32 %v281_v16, %v1917_v9  ;;  %v347_v20 = vsub.f32 %v285_v15, %v1917_v9 }
  0x8c   : > { %v362_v21 = vmul.f32 %v346_v18, %v346_v18  ;;  %v363_v27 = vmul.f32 %v347_v20, %v347_v20 }
  0x8d   : > { %v170_v22 = vpop.permute.xlu1 %169  ;;  %v400_v23 = vpop.permute.xlu0 %399 }
  0x8e   : > { %v465_v25 = vsub.f32 %v400_v23, %v1919_v10  ;;  %v378_v28 = vadd.f32 %v362_v21, %v243_v24  ;;  %v229_v34 = vsub.f32 %v170_v22, %v1915_v8  ;;  %v379_v35 = vadd.f32 %v363_v27, %v244_v26 }
  0x90   : > { %v481_v29 = vmul.f32 %v465_v25, %v465_v25  ;;  %v245_v41 = vmul.f32 %v229_v34, %v229_v34 }
  0x91   : > { %v404_v30 = vpop.permute.xlu1 %403  ;;  %v289_v31 = vpop.permute.xlu0 %288 }
  0x92   : > { %v497_v32 = vadd.f32 %v481_v29, %v378_v28  ;;  %v466_v33 = vsub.f32 %v404_v30, %v1919_v10  ;;  %v348_v37 = vsub.f32 %v289_v31, %v1917_v9 }
  0x94   : > { %1597 = vrsqrt.f32 %v497_v32  ;;  %v482_v36 = vmul.f32 %v466_v33, %v466_v33  ;;  %v364_v42 = vmul.f32 %v348_v37, %v348_v37  ;;  %vm515_vm0 = vcmp.eq.f32.partialorder %v497_v32, inf }
  0x95   : > { %v293_v38 = vpop.permute.xlu1 %292  ;;  %v174_v39 = vpop.permute.xlu0 %173  ;;  %v518_v2 = vand.u32 2147483648, %v497_v32  ;;  %vm517_vm1 = vcmp.eq.f32.partialorder %v497_v32, 0.0 }
  0x96   : > { %v498_v40 = vadd.f32 %v482_v36, %v379_v35  ;;  %v349_v43 = vsub.f32 %v293_v38, %v1917_v9  ;;  %v230_v44 = vsub.f32 %v174_v39, %v1915_v8  ;;  %v380_v48 = vadd.f32 %v364_v42, %v245_v41 }
  0x98   : > { %1599 = vrsqrt.f32 %v498_v40  ;;  %v365_v49 = vmul.f32 %v349_v43, %v349_v43  ;;  %v246_v50 = vmul.f32 %v230_v44, %v230_v44  ;;  %vm522_vm2 = vcmp.eq.f32.partialorder %v498_v40, inf }
  0x99   : > { %v178_v45 = vpop.permute.xlu1 %177  ;;  %v408_v46 = vpop.permute.xlu0 %407  ;;  %v525_v17 = vand.u32 2147483648, %v498_v40  ;;  %vm524_vm3 = vcmp.eq.f32.partialorder %v498_v40, 0.0 }
  0x9a   : > { %v467_v47 = vsub.f32 %v408_v46, %v1919_v10  ;;  %v231_v56 = vsub.f32 %v178_v45, %v1915_v8  ;;  %v381_v57 = vadd.f32 %v365_v49, %v246_v50 }
  0x9c   : > { %v483_v51 = vmul.f32 %v467_v47, %v467_v47  ;;  %v247_v0 = vmul.f32 %v231_v56, %v231_v56 }
  0x9d   : > { %v412_v52 = vpop.permute.xlu1 %411  ;;  %v297_v53 = vpop.permute.xlu0 %296 }
  0x9e   : > { %v1932_v54 = vadd.f32 %v483_v51, %v380_v48  ;;  %v468_v55 = vsub.f32 %v412_v52, %v1919_v10  ;;  %v350_v59 = vsub.f32 %v297_v53, %v1917_v9 }
  0xa0   : > { %1601 = vrsqrt.f32 %v1932_v54  ;;  %v484_v58 = vmul.f32 %v468_v55, %v468_v55  ;;  %v366_v3 = vmul.f32 %v350_v59, %v350_v59  ;;  %vm529_vm4 = vcmp.eq.f32.partialorder %v1932_v54, inf }
  0xa1   : > { %v1598_v60 = vpop.eup %1597  ;;  %v301_v61 = vpop.permute.xlu1 %300  ;;  %v532_v39 = vand.u32 2147483648, %v1932_v54  ;;  %vm531_vm5 = vcmp.eq.f32.partialorder %v1932_v54, 0.0 }
  0xa2   : > { %v182_v62 = vpop.permute.xlu0 %181  ;;  %v1938_v63 = vadd.f32 %v484_v58, %v381_v57  ;;  %v514_v1 = vmul.f32 %v1598_v60, %v497_v32  ;;  %v351_v4 = vsub.f32 %v301_v61, %v1917_v9  ;;  %v382_v18 = vadd.f32 %v366_v3, %v247_v0 }
  0xa3   : > { %v232_v5 = vsub.f32 %v182_v62, %v1915_v8 }
  0xa4   : > { %1603 = vrsqrt.f32 %v1938_v63  ;;  %v516_v12 = vsel %vm515_vm0, %v497_v32, %v514_v1  ;;  %v367_v19 = vmul.f32 %v351_v4, %v351_v4  ;;  %vm536_vm6 = vcmp.eq.f32.partialorder %v1938_v63, inf }
  0xa5   : > { %v1600_v6 = vpop.eup %1599  ;;  %v186_v7 = vpop.permute.xlu1 %185  ;;  %v519_v14 = vsel %vm517_vm1, %v518_v2, %v516_v12  ;;  %v248_v20 = vmul.f32 %v232_v5, %v232_v5  ;;  %v539_v51 = vand.u32 2147483648, %v1938_v63  ;;  %vm538_vm7 = vcmp.eq.f32.partialorder %v1938_v63, 0.0 }
  0xa6   : > { %v416_v11 = vpop.permute.xlu0 %415  ;;  %v1944_v15 = vmul.f32 -20.0, %v519_v14  ;;  %v521_v16 = vmul.f32 %v1600_v6, %v498_v40  ;;  %v233_v28 = vsub.f32 %v186_v7, %v1915_v8 }
  0xa7   : > { %v469_v13 = vsub.f32 %v416_v11, %v1919_v10  ;;  %v383_v30 = vadd.f32 %v367_v19, %v248_v20 }
  0xa8   : > { %641 = vxpose.xlu0.b32.start [1/16] %v1944_v15, 128  ;;  %v523_v24 = vsel %vm522_vm2, %v498_v40, %v521_v16  ;;  %v249_v37 = vmul.f32 %v233_v28, %v233_v28 }
  0xa9   : > { %v485_v21 = vmul.f32 %v469_v13, %v469_v13  ;;  %v420_v22 = vpop.permute.xlu1 %419  ;;  %v526_v27 = vsel %vm524_vm3, %v525_v17, %v523_v24 }
  0xaa   : > { %v305_v23 = vpop.permute.xlu0 %304  ;;  %v470_v26 = vsub.f32 %v420_v22, %v1919_v10  ;;  %v1951_v29 = vmul.f32 -20.0, %v526_v27 }
  0xab   : > { %v1947_v25 = vadd.f32 %v485_v21, %v382_v18  ;;  %v352_v32 = vsub.f32 %v305_v23, %v1917_v9 }
  0xac   : > { %v486_v31 = vmul.f32 %v470_v26, %v470_v26  ;;  %642 = vxpose.xlu0.b32.cont [2/16] %v1951_v29, 128 }
  0xad   : > { %1605 = vrsqrt.f32 %v1947_v25  ;;  %v1602_v33 = vpop.eup %1601  ;;  %v309_v34 = vpop.permute.xlu1 %308  ;;  %v368_v40 = vmul.f32 %v352_v32, %v352_v32  ;;  %vm543_vm8 = vcmp.eq.f32.partialorder %v1947_v25, inf  ;;  %v546_v12 = vand.u32 2147483648, %v1947_v25 }
  0xae   : > { %v190_v35 = vpop.permute.xlu0 %189  ;;  %v1956_v36 = vadd.f32 %v486_v31, %v383_v30  ;;  %v528_v38 = vmul.f32 %v1602_v33, %v1932_v54  ;;  %v353_v41 = vsub.f32 %v309_v34, %v1917_v9  ;;  %vm545_vm9 = vcmp.eq.f32.partialorder %v1947_v25, 0.0 }
  0xaf   : > { %v234_v42 = vsub.f32 %v190_v35, %v1915_v8  ;;  %v384_v52 = vadd.f32 %v368_v40, %v249_v37 }
  0xb0   : > { %1607 = vrsqrt.f32 %v1956_v36  ;;  %v530_v46 = vsel %vm529_vm4, %v1932_v54, %v528_v38  ;;  %v369_v53 = vmul.f32 %v353_v41, %v353_v41  ;;  %vm550_vm10 = vcmp.eq.f32.partialorder %v1956_v36, inf }
  0xb1   : > { %v1604_v43 = vpop.eup %1603  ;;  %v194_v44 = vpop.permute.xlu1 %193  ;;  %v533_v48 = vsel %vm531_vm5, %v532_v39, %v530_v46  ;;  %v250_v55 = vmul.f32 %v234_v42, %v234_v42  ;;  %v553_v26 = vand.u32 2147483648, %v1956_v36  ;;  %vm552_vm11 = vcmp.eq.f32.partialorder %v1956_v36, 0.0 }
  0xb2   : > { %v424_v45 = vpop.permute.xlu0 %423  ;;  %v1967_v49 = vmul.f32 -20.0, %v533_v48  ;;  %v535_v50 = vmul.f32 %v1604_v43, %v1938_v63  ;;  %v235_v62 = vsub.f32 %v194_v44, %v1915_v8 }
  0xb3   : > { %v471_v47 = vsub.f32 %v424_v45, %v1919_v10  ;;  %v385_v1 = vadd.f32 %v369_v53, %v250_v55 }
  0xb4   : > { %643 = vxpose.xlu0.b32.cont [3/16] %v1967_v49, 128  ;;  %v537_v54 = vsel %vm536_vm6, %v1938_v63, %v535_v50  ;;  %v251_v7 = vmul.f32 %v235_v62, %v235_v62 }
  0xb5   : > { %v487_v56 = vmul.f32 %v471_v47, %v471_v47  ;;  %v428_v57 = vpop.permute.xlu1 %427  ;;  %v540_v61 = vsel %vm538_vm7, %v539_v51, %v537_v54 }
  0xb6   : > { %v313_v58 = vpop.permute.xlu0 %312  ;;  %v472_v60 = vsub.f32 %v428_v57, %v1919_v10  ;;  %v1979_v0 = vmul.f32 -20.0, %v540_v61 }
  0xb7   : > { %v1975_v59 = vadd.f32 %v487_v56, %v384_v52  ;;  %v354_v3 = vsub.f32 %v313_v58, %v1917_v9 }
  0xb8   : > { %v488_v2 = vmul.f32 %v472_v60, %v472_v60  ;;  %644 = vxpose.xlu0.b32.cont [4/16] %v1979_v0, 128 }
  0xb9   : > { %1609 = vrsqrt.f32 %v1975_v59  ;;  %v317_v5 = vpop.permute.xlu1 %316  ;;  %v370_v13 = vmul.f32 %v354_v3, %v354_v3  ;;  %vm557_vm12 = vcmp.eq.f32.partialorder %v1975_v59, inf  ;;  %v560_v48 = vand.u32 2147483648, %v1975_v59 }
  0xba   : > { %v1606_v4 = vpop.eup %1605  ;;  %v198_v63 = vpop.permute.xlu0 %197  ;;  %v1984_v6 = vadd.f32 %v488_v2, %v385_v1  ;;  %v355_v14 = vsub.f32 %v317_v5, %v1917_v9  ;;  %vm559_vm13 = vcmp.eq.f32.partialorder %v1975_v59, 0.0 }
  0xbb   : > { %v542_v11 = vmul.f32 %v1606_v4, %v1947_v25  ;;  %v236_v16 = vsub.f32 %v198_v63, %v1915_v8  ;;  %v386_v27 = vadd.f32 %v370_v13, %v251_v7 }
  0xbc   : > { %1611 = vrsqrt.f32 %v1984_v6  ;;  %v371_v28 = vmul.f32 %v355_v14, %v355_v14  ;;  %vm564_vm14 = vcmp.eq.f32.partialorder %v1984_v6, inf  ;;  %v567_v62 = vand.u32 2147483648, %v1984_v6 }
  0xbd   : > { %v1608_v17 = vpop.eup %1607  ;;  %v202_v18 = vpop.permute.xlu1 %201  ;;  %v544_v20 = vsel %vm543_vm8, %v1947_v25, %v542_v11  ;;  %v252_v30 = vmul.f32 %v236_v16, %v236_v16  ;;  %vm566_vm15 = vcmp.eq.f32.partialorder %v1984_v6, 0.0 }
  0xbe   : > { %v432_v19 = vpop.permute.xlu0 %431  ;;  %v547_v22 = vsel %vm545_vm9, %v546_v12, %v544_v20  ;;  %v549_v24 = vmul.f32 %v1608_v17, %v1956_v36  ;;  %v237_v38 = vsub.f32 %v202_v18, %v1915_v8 }
  0xbf   : > { %v473_v21 = vsub.f32 %v432_v19, %v1919_v10  ;;  %v1995_v23 = vmul.f32 -20.0, %v547_v22  ;;  %v387_v40 = vadd.f32 %v371_v28, %v252_v30 }
  0xc0   : > { %v551_v25 = vsel %vm550_vm10, %v1956_v36, %v549_v24  ;;  %v253_v46 = vmul.f32 %v237_v38, %v237_v38 }
  0xc1   : > { %v489_v31 = vmul.f32 %v473_v21, %v473_v21  ;;  %645 = vxpose.xlu0.b32.cont [5/16] %v1995_v23, 128  ;;  %v436_v32 = vpop.permute.xlu1 %435  ;;  %v554_v37 = vsel %vm552_vm11, %v553_v26, %v551_v25 }
  0xc2   : > { %v321_v33 = vpop.permute.xlu0 %320  ;;  %v474_v35 = vsub.f32 %v436_v32, %v1919_v10  ;;  %v2007_v39 = vmul.f32 -20.0, %v554_v37 }
  0xc3   : > { %v2003_v34 = vadd.f32 %v489_v31, %v386_v27  ;;  %v356_v42 = vsub.f32 %v321_v33, %v1917_v9 }
  0xc4   : > { %v490_v41 = vmul.f32 %v474_v35, %v474_v35 }
  0xc5   : > { %1613 = vrsqrt.f32 %v2003_v34  ;;  %646 = vxpose.xlu0.b32.cont [6/16] %v2007_v39, 128  ;;  %v325_v44 = vpop.permute.xlu1 %324  ;;  %v372_v50 = vmul.f32 %v356_v42, %v356_v42  ;;  %vm571_vm0 = vcmp.eq.f32.partialorder %v2003_v34, inf  ;;  %v574_v26 = vand.u32 2147483648, %v2003_v34 }
  0xc6   : > { %v1610_v43 = vpop.eup %1609  ;;  %v206_v36 = vpop.permute.xlu0 %205  ;;  %v2012_v45 = vadd.f32 %v490_v41, %v387_v40  ;;  %v357_v51 = vsub.f32 %v325_v44, %v1917_v9  ;;  %vm573_vm1 = vcmp.eq.f32.partialorder %v2003_v34, 0.0 }
  0xc7   : > { %v556_v47 = vmul.f32 %v1610_v43, %v1975_v59  ;;  %v238_v52 = vsub.f32 %v206_v36, %v1915_v8  ;;  %v388_v1 = vadd.f32 %v372_v50, %v253_v46 }
  0xc8   : > { %1615 = vrsqrt.f32 %v2012_v45  ;;  %v373_v2 = vmul.f32 %v357_v51, %v357_v51  ;;  %vm578_vm2 = vcmp.eq.f32.partialorder %v2012_v45, inf  ;;  %v581_v41 = vand.u32 2147483648, %v2012_v45 }
  0xc9   : > { %v1612_v53 = vpop.eup %1611  ;;  %v210_v55 = vpop.permute.xlu1 %209  ;;  %v558_v57 = vsel %vm557_vm12, %v1975_v59, %v556_v47  ;;  %v254_v3 = vmul.f32 %v238_v52, %v238_v52  ;;  %vm580_vm3 = vcmp.eq.f32.partialorder %v2012_v45, 0.0 }
  0xca   : > { %v440_v56 = vpop.permute.xlu0 %439  ;;  %v561_v54 = vsel %vm559_vm13, %v560_v48, %v558_v57  ;;  %v563_v61 = vmul.f32 %v1612_v53, %v1984_v6  ;;  %v239_v13 = vsub.f32 %v210_v55, %v1915_v8 }
  0xcb   : > { %v475_v58 = vsub.f32 %v440_v56, %v1919_v10  ;;  %v2023_v60 = vmul.f32 -20.0, %v561_v54  ;;  %v389_v16 = vadd.f32 %v373_v2, %v254_v3 }
  0xcc   : > { %v565_v59 = vsel %vm564_vm14, %v1984_v6, %v563_v61  ;;  %v255_v22 = vmul.f32 %v239_v13, %v239_v13 }
  0xcd   : > { %v491_v4 = vmul.f32 %v475_v58, %v475_v58  ;;  %647 = vxpose.xlu0.b32.cont [7/16] %v2023_v60, 128  ;;  %v444_v5 = vpop.permute.xlu1 %443  ;;  %v568_v12 = vsel %vm566_vm15, %v567_v62, %v565_v59 }
  0xce   : > { %v329_v63 = vpop.permute.xlu0 %328  ;;  %v476_v11 = vsub.f32 %v444_v5, %v1919_v10  ;;  %v2035_v14 = vmul.f32 -20.0, %v568_v12 }
  0xcf   : > { %v2031_v7 = vadd.f32 %v491_v4, %v388_v1  ;;  %v358_v18 = vsub.f32 %v329_v63, %v1917_v9 }
  0xd0   : > { %v492_v17 = vmul.f32 %v476_v11, %v476_v11 }
  0xd1   : > { %1617 = vrsqrt.f32 %v2031_v7  ;;  %648 = vxpose.xlu0.b32.cont [8/16] %v2035_v14, 128  ;;  %v333_v20 = vpop.permute.xlu1 %332  ;;  %v374_v27 = vmul.f32 %v358_v18, %v358_v18  ;;  %vm585_vm4 = vcmp.eq.f32.partialorder %v2031_v7, inf  ;;  %v588_v4 = vand.u32 2147483648, %v2031_v7 }
  0xd2   : > { %v1614_v19 = vpop.eup %1613  ;;  %v214_v6 = vpop.permute.xlu0 %213  ;;  %v2040_v21 = vadd.f32 %v492_v17, %v389_v16  ;;  %v359_v28 = vsub.f32 %v333_v20, %v1917_v9  ;;  %vm587_vm5 = vcmp.eq.f32.partialorder %v2031_v7, 0.0 }
  0xd3   : > { %v570_v24 = vmul.f32 %v1614_v19, %v2003_v34  ;;  %v240_v30 = vsub.f32 %v214_v6, %v1915_v8  ;;  %v390_v42 = vadd.f32 %v374_v27, %v255_v22 }
  0xd4   : > { %1619 = vrsqrt.f32 %v2040_v21  ;;  %v375_v43 = vmul.f32 %v359_v28, %v359_v28  ;;  %vm592_vm6 = vcmp.eq.f32.partialorder %v2040_v21, inf  ;;  %v595_v20 = vand.u32 2147483648, %v2040_v21 }
  0xd5   : > { %v1616_v31 = vpop.eup %1615  ;;  %v218_v32 = vpop.permute.xlu1 %217  ;;  %v572_v25 = vsel %vm571_vm0, %v2003_v34, %v570_v24  ;;  %v256_v44 = vmul.f32 %v240_v30, %v240_v30  ;;  %vm594_vm7 = vcmp.eq.f32.partialorder %v2040_v21, 0.0 }
  0xd6   : > { %v448_v33 = vpop.permute.xlu0 %447  ;;  %v575_v37 = vsel %vm573_vm1, %v574_v26, %v572_v25  ;;  %v577_v40 = vmul.f32 %v1616_v31, %v2012_v45  ;;  %v241_v52 = vsub.f32 %v218_v32, %v1915_v8 }
  0xd7   : > { %v477_v35 = vsub.f32 %v448_v33, %v1919_v10  ;;  %v2051_v38 = vmul.f32 -20.0, %v575_v37  ;;  %v391_v55 = vadd.f32 %v375_v43, %v256_v44 }
  0xd8   : > { %v579_v34 = vsel %vm578_vm2, %v2012_v45, %v577_v40  ;;  %v257_v2 = vmul.f32 %v241_v52, %v241_v52 }
  0xd9   : > { %v493_v36 = vmul.f32 %v477_v35, %v477_v35  ;;  %649 = vxpose.xlu0.b32.cont [9/16] %v2051_v38, 128  ;;  %v452_v46 = vpop.permute.xlu1 %451  ;;  %v582_v51 = vsel %vm580_vm3, %v581_v41, %v579_v34 }
  0xda   : > { %v337_v47 = vpop.permute.xlu0 %336  ;;  %v478_v50 = vsub.f32 %v452_v46, %v1919_v10  ;;  %v2061_v53 = vmul.f32 -20.0, %v582_v51 }
  0xdb   : > { %v509_v48 = vadd.f32 %v493_v36, %v390_v42  ;;  %v360_v57 = vsub.f32 %v337_v47, %v1917_v9 }
  0xdc   : > { %v494_v56 = vmul.f32 %v478_v50, %v478_v50 }
  0xdd   : > { %1621 = vrsqrt.f32 %v509_v48  ;;  %650 = vxpose.xlu0.b32.cont [10/16] %v2061_v53, 128  ;;  %v341_v54 = vpop.permute.xlu1 %340  ;;  %v376_v5 = vmul.f32 %v360_v57, %v360_v57  ;;  %vm599_vm8 = vcmp.eq.f32.partialorder %v509_v48, inf  ;;  %v602_v33 = vand.u32 2147483648, %v509_v48 }
  0xde   : > { %v1618_v58 = vpop.eup %1617  ;;  %v222_v61 = vpop.permute.xlu0 %221  ;;  %v510_v62 = vadd.f32 %v494_v56, %v391_v55  ;;  %v361_v45 = vsub.f32 %v341_v54, %v1917_v9  ;;  %vm601_vm9 = vcmp.eq.f32.partialorder %v509_v48, 0.0 }
  0xdf   : > { %v242_v1 = vsub.f32 %v222_v61, %v1915_v8  ;;  %v584_v3 = vmul.f32 %v1618_v58, %v2031_v7  ;;  %v392_v6 = vadd.f32 %v376_v5, %v257_v2 }
  0xe0   : > { %1623 = vrsqrt.f32 %v510_v62  ;;  %v377_v63 = vmul.f32 %v361_v45, %v361_v45  ;;  %vm606_vm10 = vcmp.eq.f32.partialorder %v510_v62, inf  ;;  %v609_v41 = vand.u32 2147483648, %v510_v62 }
  0xe1   : > { %v258_v59 = vmul.f32 %v242_v1, %v242_v1  ;;  %v1620_v11 = vpop.eup %1619  ;;  %v460_v12 = vpop.permute.xlu1 %459  ;;  %v586_v16 = vsel %vm585_vm4, %v2031_v7, %v584_v3  ;;  %vm608_vm11 = vcmp.eq.f32.partialorder %v510_v62, 0.0 }
  0xe2   : > { %v456_v13 = vpop.permute.xlu0 %455  ;;  %v480_v8 = vsub.f32 %v460_v12, %v1919_v10  ;;  %v589_v17 = vsel %vm587_vm5, %v588_v4, %v586_v16  ;;  %v591_v19 = vmul.f32 %v1620_v11, %v2040_v21 }
  0xe3   : > { %v479_v9 = vsub.f32 %v456_v13, %v1919_v10  ;;  %v2074_v18 = vmul.f32 -20.0, %v589_v17  ;;  %v393_v22 = vadd.f32 %v377_v63, %v258_v59  ;;  %v2131_v17 = vmov 0.0  }
  0xe4   : > { %v496_v24 = vmul.f32 %v480_v8, %v480_v8  ;;  %v593_v7 = vsel %vm592_vm6, %v2040_v21, %v591_v19  ;;  %v2133_v19 = vmov 0.0  }
  0xe5   : > { %v495_v26 = vmul.f32 %v479_v9, %v479_v9  ;;  %651 = vxpose.xlu0.b32.cont [11/16] %v2074_v18, 128  ;;  %v596_v28 = vsel %vm594_vm7, %v595_v20, %v593_v7  ;;  %v2129_v9 = vmov 0.0   ;;  %v2135_v20 = vmov 0.0  }
  0xe6   : > { %v512_v10 = vadd.f32 %v496_v24, %v393_v22  ;;  %v2082_v30 = vmul.f32 -20.0, %v596_v28  ;;  %v2139_v22 = vmov 0.0   ;;  %v2141_v24 = vmov 0.0  }
  0xe7   : > { %v511_v27 = vadd.f32 %v495_v26, %v392_v6  ;;  %v2137_v6 = vmov 0.0   ;;  %v2143_v26 = vmov 0.0   ;;  %v2145_v7 = vmov 0.0  }
  0xe8   : > { %1625 = vrsqrt.f32 %v512_v10  ;;  %vm620_vm13 = vcmp.eq.f32.partialorder %v512_v10, inf  ;;  %v623_v55 = vand.u32 2147483648, %v512_v10  ;;  %vm622_vm15 = vcmp.eq.f32.partialorder %v512_v10, 0.0 }
  0xe9   : > { %1627 = vrsqrt.f32 %v511_v27  ;;  %652 = vxpose.xlu0.b32.cont [12/16] %v2082_v30, 128  ;;  %vm613_vm12 = vcmp.eq.f32.partialorder %v511_v27, inf  ;;  %vm615_vm14 = vcmp.eq.f32.partialorder %v511_v27, 0.0  ;;  %v2151_v28 = vmov 0.0  }
  0xea   : > { %v1622_v31 = vpop.eup %1621 }
  0xeb   : > { %v598_v32 = vmul.f32 %v1622_v31, %v509_v48  ;;  %v2153_v31 = vmov 0.0  }
  0xed   : > { %v600_v25 = vsel %vm599_vm8, %v509_v48, %v598_v32  ;;  %v1624_v35 = vpop.eup %1623  ;;  %v616_v48 = vand.u32 2147483648, %v511_v27  ;;  %v2155_v32 = vmov 0.0  }
  0xee   : > { %v603_v37 = vsel %vm601_vm9, %v602_v33, %v600_v25  ;;  %v605_v21 = vmul.f32 %v1624_v35, %v510_v62  ;;  %v2157_v33 = vmov 0.0   ;;  %v2159_v25 = vmov 0.0  }
  0xef   : > { %v2085_v40 = vmul.f32 -20.0, %v603_v37 }
  0xf0   : > { %v607_v42 = vsel %vm606_vm10, %v510_v62, %v605_v21 }
  0xf1   : > { %2413 = vst [vmem:[#allocation2_spill] sm:$0xff] %v2085_v40  ;;  %653 = vxpose.xlu0.b32.cont [13/16] %v2085_v40, 128  ;;  %v610_v43 = vsel %vm608_vm11, %v609_v41, %v607_v42 }
  0xf2   : > { %v2088_v44 = vmul.f32 -20.0, %v610_v43 }
  0xf4   : > { %2414 = vst [vmem:[#allocation3_spill] sm:$0xff] %v2088_v44 }
  0xf5   : > { %654 = vxpose.xlu0.b32.cont [14/16] %v2088_v44, 128  ;;  %v1626_v36 = vpop.eup %1625 }
  0xf6   : > { %v1628_v46 = vpop.eup %1627  ;;  %v619_v47 = vmul.f32 %v1626_v36, %v512_v10 }
  0xf7   : > { %v612_v34 = vmul.f32 %v1628_v46, %v511_v27 }
  0xf8   : > { %v621_v51 = vsel %vm620_vm13, %v512_v10, %v619_v47  ;;  %v2147_v10 = vmov 0.0  }
  0xf9   : > { %v614_v50 = vsel %vm613_vm12, %v511_v27, %v612_v34  ;;  %v624_v57 = vsel %vm622_vm15, %v623_v55, %v621_v51  ;;  %v2149_v27 = vmov 0.0  }
  0xfa   : > { %v617_v52 = vsel %vm615_vm14, %v616_v48, %v614_v50  ;;  %v2094_v58 = vmul.f32 -20.0, %v624_v57 }
  0xfb   : > { %v2091_v56 = vmul.f32 -20.0, %v617_v52 }
  0xfd   : > { %2415 = vst [vmem:[#allocation4_spill] sm:$0xff] %v2091_v56  ;;  %655 = vxpose.xlu0.b32.cont [15/16] %v2091_v56, 128 }
 0x101   : > { %656 = vxpose.xlu0.b32.end [16/16] %v2094_v58, 128 }
 0x141   : > { %v2097_v54 = vpop.trf.xlu0 }
 0x145   : > { %v2099_v61 = vpop.trf.xlu0 }
 0x149   : > { %v2101_v62 = vpop.trf.xlu0 }
 0x14d   : > { %v2103_v45 = vpop.trf.xlu0 }
 0x151   : > { %v2105_v1 = vpop.trf.xlu0 }
 0x152   : > { %2416 = vst [vmem:[#allocation5_spill] sm:$0xff] %v2105_v1 }
 0x155   : > { %v2107_v2 = vpop.trf.xlu0 }
 0x159   : > { %v2109_v3 = vpop.trf.xlu0 }
 0x15d   : > { %v2111_v4 = vpop.trf.xlu0 }
 0x161   : > { %v2113_v5 = vpop.trf.xlu0 }
 0x165   : > { %v2115_v63 = vpop.trf.xlu0 }
 0x169   : > { %v2117_v59 = vpop.trf.xlu0 }
 0x16d   : > { %v2119_v11 = vpop.trf.xlu0 }
 0x171   : > { %v2121_v12 = vpop.trf.xlu0 }
 0x175   : > { %v2123_v13 = vpop.trf.xlu0 }
 0x179   : > { %v2125_v16 = vpop.trf.xlu0 }
 0x17d   : > { %v2127_v8 = vpop.trf.xlu0 }
 0x17e LB: >> { %v1877_v35 = vmov 0   ;;  %v2417_v40 = vld [vmem:[#allocation2_spill] sm:$0xff]  ;;  %v2418_v44 = vld [vmem:[#allocation3_spill] sm:$0xff]  ;;  %v2419_v56 = vld [vmem:[#allocation4_spill] sm:$0xff]  ;;  %s678_s21 = sadd.s32 1, %s1875_s21   ;;  %s1875_s21 = sphi %s2161_s21, %s678_s21   ;;  %v1871_v25 = vphi %v2159_v25, %v2437_v25   ;;  %v1867_v33 = vphi %v2157_v33, %v2436_v33   ;;  %v1863_v32 = vphi %v2155_v32, %v2435_v32   ;;  %v1859_v31 = vphi %v2153_v31, %v2434_v31   ;;  %v1855_v28 = vphi %v2151_v28, %v2433_v28   ;;  %v1851_v27 = vphi %v2149_v27, %v2432_v27   ;;  %v1847_v10 = vphi %v2147_v10, %v2431_v10   ;;  %v1843_v7 = vphi %v2145_v7, %v2430_v7   ;;  %v1839_v26 = vphi %v2143_v26, %v2429_v26   ;;  %v1835_v24 = vphi %v2141_v24, %v2428_v24   ;;  %v1831_v22 = vphi %v2139_v22, %v2427_v22   ;;  %v1827_v6 = vphi %v2137_v6, %v2426_v6   ;;  %v1823_v20 = vphi %v2135_v20, %v2425_v20   ;;  %v1819_v19 = vphi %v2133_v19, %v2424_v19   ;;  %v1815_v17 = vphi %v2131_v17, %v2423_v17   ;;  %v1811_v9 = vphi %v2129_v9, %v2422_v9  }
 0x17f   : >> { %1630 = vset.pattern.permute.xlu1 %v1877_v35  ;;  %1629 = vset.pattern.permute.xlu0 %v1877_v35  ;;  %v2420_v1 = vld [vmem:[#allocation5_spill] sm:$0xff]  ;;  %p2308_p4 = scmp.ge.s32.totalorder %s678_s21, 64  }
 0x180   : >> { %698 = vperm.xlu0 %1629, %v1871_v25   ;;  %708 = vperm.xlu1 %1630, %v1863_v32   ;;  %vm1324_vm0 = vcmask (%p2308_p4), 0  }
 0x184   : >> { %703 = vperm.xlu0 %1629, %v1867_v33   ;;  %713 = vperm.xlu1 %1630, %v1859_v31  }
 0x188   : >> { %718 = vperm.xlu0 %1629, %v1855_v28   ;;  %723 = vperm.xlu1 %1630, %v1851_v27  }
 0x18c   : >> { %728 = vperm.xlu0 %1629, %v1847_v10   ;;  %733 = vperm.xlu1 %1630, %v1843_v7  }
 0x190   : >> { %738 = vperm.xlu0 %1629, %v1839_v26   ;;  %743 = vperm.xlu1 %1630, %v1835_v24  }
 0x194   : >> { %748 = vperm.xlu0 %1629, %v1831_v22   ;;  %753 = vperm.xlu1 %1630, %v1827_v6  }
 0x198   : >> { %758 = vperm.xlu0 %1629, %v1823_v20   ;;  %763 = vperm.xlu1 %1630, %v1819_v19  }
 0x19c   : >> { %768 = vperm.xlu0 %1629, %v1815_v17   ;;  %773 = vperm.xlu1 %1630, %v1811_v9  }
 0x1fb   : >> { %v699_v37 = vpop.permute.xlu0 %698  ;;  %v709_v21 = vpop.permute.xlu1 %708 }
 0x1fc   : >> { %v776_v17 = vadd.f32 %v699_v37, %v1944_v15  ;;  %v778_v22 = vadd.f32 %v709_v21, %v1967_v49 }
 0x1ff   : >> { %v704_v41 = vpop.permute.xlu0 %703  ;;  %v714_v42 = vpop.permute.xlu1 %713 }
 0x200   : >> { %v777_v19 = vadd.f32 %v704_v41, %v1951_v29  ;;  %v779_v24 = vadd.f32 %v714_v42, %v1979_v0 }
 0x203   : >> { %v719_v43 = vpop.permute.xlu0 %718  ;;  %v724_v36 = vpop.permute.xlu1 %723 }
 0x204   : >> { %v780_v52 = vadd.f32 %v719_v43, %v1995_v23  ;;  %v781_v55 = vadd.f32 %v724_v36, %v2007_v39 }
 0x206   : >> { %v792_v28 = vmax.f32 %v776_v17, %v780_v52  ;;  %v793_v31 = vmax.f32 %v777_v19, %v781_v55 }
 0x207   : >> { %v729_v46 = vpop.permute.xlu0 %728  ;;  %v734_v47 = vpop.permute.xlu1 %733 }
 0x208   : >> { %v782_v57 = vadd.f32 %v729_v46, %v2023_v60  ;;  %v783_v9 = vadd.f32 %v734_v47, %v2035_v14 }
 0x20a   : >> { %v794_v25 = vmax.f32 %v778_v22, %v782_v57  ;;  %v795_v35 = vmax.f32 %v779_v24, %v783_v9 }
 0x20b   : >> { %v739_v34 = vpop.permute.xlu0 %738  ;;  %v744_v48 = vpop.permute.xlu1 %743 }
 0x20c   : >> { %v784_v20 = vadd.f32 %v739_v34, %v2051_v38  ;;  %v2190_v6 = vadd.f32 %v744_v48, %v2061_v53 }
 0x20e   : >> { %v796_v37 = vmax.f32 %v792_v28, %v784_v20  ;;  %v797_v21 = vmax.f32 %v793_v31, %v2190_v6 }
 0x20f   : >> { %v749_v50 = vpop.permute.xlu0 %748  ;;  %v754_v51 = vpop.permute.xlu1 %753 }
 0x210   : >> { %v2195_v26 = vadd.f32 %v749_v50, %v2074_v18  ;;  %v2198_v7 = vadd.f32 %v754_v51, %v2082_v30 }
 0x212   : >> { %v798_v41 = vmax.f32 %v794_v25, %v2195_v26  ;;  %v799_v42 = vmax.f32 %v795_v35, %v2198_v7 }
 0x213   : >> { %v759_v10 = vpop.permute.xlu0 %758  ;;  %v764_v27 = vpop.permute.xlu1 %763 }
 0x214   : >> { %v2201_v32 = vadd.f32 %v759_v10, %v2417_v40  ;;  %v2204_v33 = vadd.f32 %v764_v27, %v2418_v44 }
 0x216   : >> { %v800_v46 = vmax.f32 %v796_v37, %v2201_v32  ;;  %v801_v47 = vmax.f32 %v797_v21, %v2204_v33 }
 0x217   : >> { %v769_v43 = vpop.permute.xlu0 %768  ;;  %v774_v36 = vpop.permute.xlu1 %773 }
 0x218   : >> { %v2212_v34 = vadd.f32 %v769_v43, %v2419_v56  ;;  %v2215_v48 = vadd.f32 %v774_v36, %v2094_v58  ;;  %v804_v10 = vmax.f32 %v800_v46, %v801_v47 }
 0x21a   : >> { %v802_v50 = vmax.f32 %v798_v41, %v2212_v34  ;;  %v803_v51 = vmax.f32 %v799_v42, %v2215_v48 }
 0x21c   : >> { %v805_v27 = vmax.f32 %v802_v50, %v803_v51 }
 0x21e   : >> { %v806_v28 = vmax.f32 %v804_v10, %v805_v27 }
 0x220   : >> { %v807_v31 = vrot.slane %v806_v28, 4 }
 0x222   : >> { %v808_v25 = vmax.f32 %v806_v28, %v807_v31 }
 0x224   : >> { %v809_v35 = vrot.slane %v808_v25, 2 }
 0x226   : >> { %v810_v40 = vmax.f32 %v808_v25, %v809_v35 }
 0x228   : >> { %v811_v37 = vrot.slane %v810_v40, 1 }
 0x22a   : >> { %v2219_v44 = vmax.f32 %v810_v40, %v811_v37 }
 0x22c   : >> { %v813_v21 = vsub.f32 %v776_v17, %v2219_v44  ;;  %v814_v43 = vsub.f32 %v777_v19, %v2219_v44  ;;  %v815_v36 = vsub.f32 %v778_v22, %v2219_v44  ;;  %v816_v41 = vsub.f32 %v779_v24, %v2219_v44 }
 0x22d   : >> { %v817_v46 = vsub.f32 %v780_v52, %v2219_v44  ;;  %v818_v50 = vsub.f32 %v781_v55, %v2219_v44  ;;  %v819_v40 = vsub.f32 %v782_v57, %v2219_v44  ;;  %v820_v19 = vsub.f32 %v783_v9, %v2219_v44 }
 0x22e   : >> { %v829_v56 = vmul.f32 1.442695, %v813_v21  ;;  %v831_v42 = vmul.f32 1.442695, %v814_v43  ;;  %v833_v47 = vmul.f32 1.442695, %v815_v36  ;;  %v821_v24 = vsub.f32 %v784_v20, %v2219_v44 }
 0x22f   : >> { %v835_v51 = vmul.f32 1.442695, %v816_v41  ;;  %v837_v17 = vmul.f32 1.442695, %v817_v46  ;;  %v839_v22 = vmul.f32 1.442695, %v818_v50  ;;  %v822_v52 = vsub.f32 %v2190_v6, %v2219_v44 }
 0x230   : >> { %1631 = vpow2.f32 %v829_v56  ;;  %v841_v10 = vmul.f32 1.442695, %v819_v40  ;;  %v843_v56 = vmul.f32 1.442695, %v820_v19  ;;  %v823_v55 = vsub.f32 %v2195_v26, %v2219_v44 }
 0x231   : >> { %1633 = vpow2.f32 %v831_v42  ;;  %v845_v57 = vmul.f32 1.442695, %v821_v24  ;;  %v824_v9 = vsub.f32 %v2198_v7, %v2219_v44  ;;  %v847_v28 = vmul.f32 1.442695, %v822_v52 }
 0x232   : >> { %1635 = vpow2.f32 %v833_v47  ;;  %v825_v20 = vsub.f32 %v2201_v32, %v2219_v44  ;;  %v849_v25 = vmul.f32 1.442695, %v823_v55  ;;  %v826_v37 = vsub.f32 %v2204_v33, %v2219_v44 }
 0x233   : >> { %1637 = vpow2.f32 %v835_v51  ;;  %v851_v26 = vmul.f32 1.442695, %v824_v9  ;;  %v827_v7 = vsub.f32 %v2212_v34, %v2219_v44  ;;  %v828_v32 = vsub.f32 %v2215_v48, %v2219_v44 }
 0x234   : >> { %1639 = vpow2.f32 %v837_v17  ;;  %v853_v36 = vmul.f32 1.442695, %v825_v20  ;;  %v855_v46 = vmul.f32 1.442695, %v826_v37 }
 0x235   : >> { %1641 = vpow2.f32 %v839_v22  ;;  %v857_v33 = vmul.f32 1.442695, %v827_v7  ;;  %v859_v17 = vmul.f32 1.442695, %v828_v32 }
 0x236   : >> { %1643 = vpow2.f32 %v841_v10 }
 0x237   : >> { %1645 = vpow2.f32 %v843_v56 }
 0x238   : >> { %1647 = vpow2.f32 %v845_v57 }
 0x239   : >> { %1649 = vpow2.f32 %v847_v28 }
 0x23a   : >> { %1651 = vpow2.f32 %v849_v25 }
 0x23b   : >> { %1653 = vpow2.f32 %v851_v26 }
 0x23c   : >> { %1655 = vpow2.f32 %v853_v36 }
 0x23d   : >> { %v1632_v27 = vpop.eup %1631  ;;  %1657 = vpow2.f32 %v855_v46 }
 0x23e   : >> { %v1634_v31 = vpop.eup %1633  ;;  %1659 = vpow2.f32 %v857_v33 }
 0x23f   : >> { %v861_v6 = vadd.f32 %v1634_v31, %v1632_v27  ;;  %v1636_v35 = vpop.eup %1635  ;;  %1661 = vpow2.f32 %v859_v17 }
 0x240   : >> { %v1638_v43 = vpop.eup %1637 }
 0x241   : >> { %v862_v21 = vadd.f32 %v1636_v35, %v861_v6  ;;  %v1640_v42 = vpop.eup %1639 }
 0x242   : >> { %v1642_v50 = vpop.eup %1641 }
 0x243   : >> { %v863_v41 = vadd.f32 %v1638_v43, %v862_v21  ;;  %v1644_v40 = vpop.eup %1643 }
 0x244   : >> { %v1646_v22 = vpop.eup %1645 }
 0x245   : >> { %v864_v47 = vadd.f32 %v1640_v42, %v863_v41  ;;  %v1648_v24 = vpop.eup %1647 }
 0x246   : >> { %v1650_v52 = vpop.eup %1649 }
 0x247   : >> { %v865_v51 = vadd.f32 %v1642_v50, %v864_v47  ;;  %v1652_v48 = vpop.eup %1651 }
 0x248   : >> { %v1654_v57 = vpop.eup %1653 }
 0x249   : >> { %v866_v19 = vadd.f32 %v1644_v40, %v865_v51  ;;  %v1656_v9 = vpop.eup %1655 }
 0x24a   : >> { %v1658_v31 = vpop.eup %1657 }
 0x24b   : >> { %v867_v34 = vadd.f32 %v1646_v22, %v866_v19  ;;  %v1660_v25 = vpop.eup %1659 }
 0x24c   : >> { %v1662_v35 = vpop.eup %1661 }
 0x24d   : >> { %v868_v10 = vadd.f32 %v1648_v24, %v867_v34 }
 0x24f   : >> { %v869_v56 = vadd.f32 %v1650_v52, %v868_v10 }
 0x251   : >> { %v870_v55 = vadd.f32 %v1652_v48, %v869_v56 }
 0x253   : >> { %v871_v27 = vadd.f32 %v1654_v57, %v870_v55 }
 0x255   : >> { %v872_v28 = vadd.f32 %v1656_v9, %v871_v27 }
 0x257   : >> { %v873_v20 = vadd.f32 %v1658_v31, %v872_v28 }
 0x259   : >> { %v874_v6 = vadd.f32 %v1660_v25, %v873_v20 }
 0x25b   : >> { %v875_v37 = vadd.f32 %v1662_v35, %v874_v6 }
 0x25d   : >> { %v876_v26 = vrot.slane %v875_v37, 4 }
 0x25f   : >> { %v877_v21 = vadd.f32 %v876_v26, %v875_v37 }
 0x261   : >> { %v878_v43 = vrot.slane %v877_v21, 2 }
 0x263   : >> { %v879_v7 = vadd.f32 %v878_v43, %v877_v21 }
 0x265   : >> { %v880_v36 = vrot.slane %v879_v7, 1 }
 0x267   : >> { %v881_v41 = vadd.f32 %v880_v36, %v879_v7 }
 0x269   : >> { %1663 = vlog2.f32 %v881_v41 }
 0x276   : >> { %v1664_v42 = vpop.eup %1663 }
 0x277   : >> { %v883_v32 = vmul.f32 0.6931472, %v1664_v42 }
 0x279   : >> { %v884_v46 = vadd.f32 %v883_v32, %v2219_v44 }
 0x27b   : >> { %v2245_v47 = vsub.f32 -4.8520303, %v884_v46 }
 0x27d   : >> { %886 = vxpose.xlu0.b32.start.end [1/1] (short) %v2245_v47, 128 }
 0x2f9   : >> { %v902_v50 = vpop.trf.xlu0 }
 0x2fa   : >> { %920 = vperm.xlu1 %1630, %v902_v50  }
 0x2fd   : >> { %v903_v33 = vpop.trf.xlu0 }
 0x2fe   : >> { %925 = vperm.xlu1 %1630, %v903_v33  }
 0x301   : >> { %v904_v51 = vpop.trf.xlu0 }
 0x302   : >> { %930 = vperm.xlu1 %1630, %v904_v51  }
 0x305   : >> { %v905_v40 = vpop.trf.xlu0 }
 0x306   : >> { %935 = vperm.xlu1 %1630, %v905_v40  }
 0x309   : >> { %v906_v17 = vpop.trf.xlu0 }
 0x30a   : >> { %940 = vperm.xlu1 %1630, %v906_v17  }
 0x30d   : >> { %v907_v19 = vpop.trf.xlu0 }
 0x30e   : >> { %945 = vperm.xlu1 %1630, %v907_v19  }
 0x311   : >> { %v908_v22 = vpop.trf.xlu0 }
 0x312   : >> { %950 = vperm.xlu1 %1630, %v908_v22  }
 0x315   : >> { %v909_v34 = vpop.trf.xlu0 }
 0x316   : >> { %955 = vperm.xlu1 %1630, %v909_v34  }
 0x319   : >> { %v910_v44 = vpop.trf.xlu0 }
 0x31a   : >> { %960 = vperm.xlu0 %1629, %v910_v44  }
 0x31d   : >> { %v911_v24 = vpop.trf.xlu0 }
 0x31e   : >> { %965 = vperm.xlu1 %1630, %v911_v24  }
 0x321   : >> { %v912_v10 = vpop.trf.xlu0 }
 0x322   : >> { %970 = vperm.xlu1 %1630, %v912_v10  }
 0x325   : >> { %v913_v52 = vpop.trf.xlu0 }
 0x326   : >> { %975 = vperm.xlu1 %1630, %v913_v52  }
 0x329   : >> { %v914_v56 = vpop.trf.xlu0 }
 0x32a   : >> { %980 = vperm.xlu1 %1630, %v914_v56  }
 0x32d   : >> { %v915_v48 = vpop.trf.xlu0 }
 0x32e   : >> { %985 = vperm.xlu1 %1630, %v915_v48  }
 0x331   : >> { %v916_v55 = vpop.trf.xlu0 }
 0x332   : >> { %990 = vperm.xlu1 %1630, %v916_v55  }
 0x335   : >> { %v917_v57 = vpop.trf.xlu0 }
 0x336   : >> { %995 = vperm.xlu1 %1630, %v917_v57  }
 0x375   : >> { %v921_v27 = vpop.permute.xlu1 %920 }
 0x376   : >> { %v998_v51 = vadd.f32 %v921_v27, %v2097_v54 }
 0x379   : >> { %v926_v9 = vpop.permute.xlu1 %925 }
 0x37a   : >> { %v999_v46 = vadd.f32 %v926_v9, %v2099_v61 }
 0x37d   : >> { %v931_v28 = vpop.permute.xlu1 %930 }
 0x37e   : >> { %v1000_v40 = vadd.f32 %v931_v28, %v2101_v62 }
 0x381   : >> { %v936_v31 = vpop.permute.xlu1 %935 }
 0x382   : >> { %v1001_v17 = vadd.f32 %v936_v31, %v2103_v45 }
 0x385   : >> { %v941_v20 = vpop.permute.xlu1 %940 }
 0x386   : >> { %v1002_v42 = vadd.f32 %v941_v20, %v2420_v1 }
 0x388   : >> { %v1014_v52 = vmax.f32 %v998_v51, %v1002_v42 }
 0x389   : >> { %v946_v25 = vpop.permute.xlu1 %945 }
 0x38a   : >> { %v1003_v36 = vadd.f32 %v946_v25, %v2107_v2 }
 0x38c   : >> { %v1015_v34 = vmax.f32 %v999_v46, %v1003_v36 }
 0x38d   : >> { %v951_v6 = vpop.permute.xlu1 %950 }
 0x38e   : >> { %v1004_v32 = vadd.f32 %v951_v6, %v2109_v3 }
 0x390   : >> { %v1016_v56 = vmax.f32 %v1000_v40, %v1004_v32 }
 0x391   : >> { %v956_v35 = vpop.permute.xlu1 %955 }
 0x392   : >> { %v1005_v50 = vadd.f32 %v956_v35, %v2111_v4 }
 0x394   : >> { %v1017_v48 = vmax.f32 %v1001_v17, %v1005_v50 }
 0x395   : >> { %v961_v41 = vpop.permute.xlu0 %960 }
 0x396   : >> { %v1006_v19 = vadd.f32 %v961_v41, %v2113_v5 }
 0x398   : >> { %v1018_v9 = vmax.f32 %v1014_v52, %v1006_v19 }
 0x399   : >> { %v966_v37 = vpop.permute.xlu1 %965 }
 0x39a   : >> { %v2254_v33 = vadd.f32 %v966_v37, %v2115_v63 }
 0x39c   : >> { %v1019_v55 = vmax.f32 %v1015_v34, %v2254_v33 }
 0x39d   : >> { %v971_v26 = vpop.permute.xlu1 %970 }
 0x39e   : >> { %v1008_v44 = vadd.f32 %v971_v26, %v2117_v59 }
 0x3a0   : >> { %v1020_v31 = vmax.f32 %v1016_v56, %v1008_v44 }
 0x3a1   : >> { %v976_v21 = vpop.permute.xlu1 %975 }
 0x3a2   : >> { %v2262_v24 = vadd.f32 %v976_v21, %v2119_v11 }
 0x3a4   : >> { %v1021_v20 = vmax.f32 %v1017_v48, %v2262_v24 }
 0x3a5   : >> { %v981_v43 = vpop.permute.xlu1 %980 }
 0x3a6   : >> { %v2269_v57 = vadd.f32 %v981_v43, %v2121_v12 }
 0x3a8   : >> { %v1022_v35 = vmax.f32 %v1018_v9, %v2269_v57 }
 0x3a9   : >> { %v986_v7 = vpop.permute.xlu1 %985 }
 0x3aa   : >> { %v2265_v10 = vadd.f32 %v986_v7, %v2123_v13 }
 0x3ac   : >> { %v1023_v25 = vmax.f32 %v1019_v55, %v2265_v10 }
 0x3ad   : >> { %v991_v22 = vpop.permute.xlu1 %990 }
 0x3ae   : >> { %v2272_v27 = vadd.f32 %v991_v22, %v2125_v16  ;;  %v1026_v21 = vmax.f32 %v1022_v35, %v1023_v25 }
 0x3b0   : >> { %v1024_v37 = vmax.f32 %v1020_v31, %v2272_v27 }
 0x3b1   : >> { %v996_v28 = vpop.permute.xlu1 %995 }
 0x3b2   : >> { %v2277_v6 = vadd.f32 %v996_v28, %v2127_v8 }
 0x3b4   : >> { %v1025_v26 = vmax.f32 %v1021_v20, %v2277_v6 }
 0x3b6   : >> { %v1027_v43 = vmax.f32 %v1024_v37, %v1025_v26 }
 0x3b8   : >> { %v1028_v7 = vmax.f32 %v1026_v21, %v1027_v43 }
 0x3ba   : >> { %v1029_v41 = vrot.slane %v1028_v7, 4 }
 0x3bc   : >> { %v1030_v22 = vmax.f32 %v1028_v7, %v1029_v41 }
 0x3be   : >> { %v1031_v34 = vrot.slane %v1030_v22, 2 }
 0x3c0   : >> { %v1032_v52 = vmax.f32 %v1030_v22, %v1031_v34 }
 0x3c2   : >> { %v1033_v56 = vrot.slane %v1032_v52, 1 }
 0x3c4   : >> { %v2282_v48 = vmax.f32 %v1032_v52, %v1033_v56 }
 0x3c6   : >> { %v1035_v55 = vsub.f32 %v998_v51, %v2282_v48  ;;  %v1036_v28 = vsub.f32 %v999_v46, %v2282_v48  ;;  %v1037_v9 = vsub.f32 %v1000_v40, %v2282_v48  ;;  %v1038_v31 = vsub.f32 %v1001_v17, %v2282_v48 }
 0x3c7   : >> { %v1039_v25 = vsub.f32 %v1002_v42, %v2282_v48  ;;  %v1040_v37 = vsub.f32 %v1003_v36, %v2282_v48  ;;  %v1041_v21 = vsub.f32 %v1004_v32, %v2282_v48  ;;  %v1042_v46 = vsub.f32 %v1005_v50, %v2282_v48 }
 0x3c8   : >> { %v1051_v1 = vmul.f32 1.442695, %v1035_v55  ;;  %v1053_v20 = vmul.f32 1.442695, %v1036_v28  ;;  %v1055_v35 = vmul.f32 1.442695, %v1037_v9  ;;  %v1043_v17 = vsub.f32 %v1006_v19, %v2282_v48 }
 0x3c9   : >> { %v1057_v26 = vmul.f32 1.442695, %v1038_v31  ;;  %v1059_v51 = vmul.f32 1.442695, %v1039_v25  ;;  %v1061_v40 = vmul.f32 1.442695, %v1040_v37  ;;  %v1044_v42 = vsub.f32 %v2254_v33, %v2282_v48 }
 0x3ca   : >> { %1665 = vpow2.f32 %v1051_v1  ;;  %v1063_v43 = vmul.f32 1.442695, %v1041_v21  ;;  %v1065_v1 = vmul.f32 1.442695, %v1042_v46  ;;  %v1045_v36 = vsub.f32 %v1008_v44, %v2282_v48 }
 0x3cb   : >> { %1667 = vpow2.f32 %v1053_v20  ;;  %v1067_v7 = vmul.f32 1.442695, %v1043_v17  ;;  %v1046_v41 = vsub.f32 %v2262_v24, %v2282_v48  ;;  %v1069_v50 = vmul.f32 1.442695, %v1044_v42 }
 0x3cc   : >> { %1669 = vpow2.f32 %v1055_v35  ;;  %v1047_v19 = vsub.f32 %v2269_v57, %v2282_v48  ;;  %v1071_v34 = vmul.f32 1.442695, %v1045_v36  ;;  %v1048_v56 = vsub.f32 %v2265_v10, %v2282_v48 }
 0x3cd   : >> { %1671 = vpow2.f32 %v1057_v26  ;;  %v1073_v44 = vmul.f32 1.442695, %v1046_v41  ;;  %v1049_v24 = vsub.f32 %v2272_v27, %v2282_v48  ;;  %v1050_v57 = vsub.f32 %v2277_v6, %v2282_v48 }
 0x3ce   : >> { %1673 = vpow2.f32 %v1059_v51  ;;  %v1075_v9 = vmul.f32 1.442695, %v1047_v19  ;;  %v1077_v25 = vmul.f32 1.442695, %v1048_v56 }
 0x3cf   : >> { %1675 = vpow2.f32 %v1061_v40  ;;  %v1079_v10 = vmul.f32 1.442695, %v1049_v24  ;;  %v1081_v51 = vmul.f32 1.442695, %v1050_v57 }
 0x3d0   : >> { %1677 = vpow2.f32 %v1063_v43 }
 0x3d1   : >> { %1679 = vpow2.f32 %v1065_v1 }
 0x3d2   : >> { %1681 = vpow2.f32 %v1067_v7 }
 0x3d3   : >> { %1683 = vpow2.f32 %v1069_v50 }
 0x3d4   : >> { %1685 = vpow2.f32 %v1071_v34 }
 0x3d5   : >> { %1687 = vpow2.f32 %v1073_v44 }
 0x3d6   : >> { %1689 = vpow2.f32 %v1075_v9 }
 0x3d7   : >> { %v1666_v32 = vpop.eup %1665  ;;  %1691 = vpow2.f32 %v1077_v25 }
 0x3d8   : >> { %v1668_v22 = vpop.eup %1667  ;;  %1693 = vpow2.f32 %v1079_v10 }
 0x3d9   : >> { %v1083_v52 = vadd.f32 %v1668_v22, %v1666_v32  ;;  %v1670_v33 = vpop.eup %1669  ;;  %1695 = vpow2.f32 %v1081_v51 }
 0x3da   : >> { %v1672_v28 = vpop.eup %1671 }
 0x3db   : >> { %v1084_v55 = vadd.f32 %v1670_v33, %v1083_v52  ;;  %v1674_v20 = vpop.eup %1673 }
 0x3dc   : >> { %v1676_v37 = vpop.eup %1675 }
 0x3dd   : >> { %v1085_v31 = vadd.f32 %v1672_v28, %v1084_v55  ;;  %v1678_v21 = vpop.eup %1677 }
 0x3de   : >> { %v1680_v40 = vpop.eup %1679 }
 0x3df   : >> { %v1086_v35 = vadd.f32 %v1674_v20, %v1085_v31  ;;  %v1682_v17 = vpop.eup %1681 }
 0x3e0   : >> { %v1684_v42 = vpop.eup %1683 }
 0x3e1   : >> { %v1087_v26 = vadd.f32 %v1676_v37, %v1086_v35  ;;  %v1686_v6 = vpop.eup %1685 }
 0x3e2   : >> { %v1688_v7 = vpop.eup %1687 }
 0x3e3   : >> { %v1088_v46 = vadd.f32 %v1678_v21, %v1087_v26  ;;  %v1690_v41 = vpop.eup %1689 }
 0x3e4   : >> { %v1692_v22 = vpop.eup %1691 }
 0x3e5   : >> { %v1089_v27 = vadd.f32 %v1680_v40, %v1088_v46  ;;  %v1694_v34 = vpop.eup %1693 }
 0x3e6   : >> { %v1696_v33 = vpop.eup %1695 }
 0x3e7   : >> { %v1090_v43 = vadd.f32 %v1682_v17, %v1089_v27 }
 0x3e9   : >> { %v1091_v1 = vadd.f32 %v1684_v42, %v1090_v43 }
 0x3eb   : >> { %v1092_v36 = vadd.f32 %v1686_v6, %v1091_v1 }
 0x3ed   : >> { %v1093_v32 = vadd.f32 %v1688_v7, %v1092_v36 }
 0x3ef   : >> { %v1094_v50 = vadd.f32 %v1690_v41, %v1093_v32 }
 0x3f1   : >> { %v1095_v19 = vadd.f32 %v1692_v22, %v1094_v50 }
 0x3f3   : >> { %v1096_v52 = vadd.f32 %v1694_v34, %v1095_v19 }
 0x3f5   : >> { %v1097_v56 = vadd.f32 %v1696_v33, %v1096_v52 }
 0x3f7   : >> { %v1098_v44 = vrot.slane %v1097_v56, 4 }
 0x3f9   : >> { %v1099_v55 = vadd.f32 %v1098_v44, %v1097_v56 }
 0x3fb   : >> { %v1100_v28 = vrot.slane %v1099_v55, 2 }
 0x3fd   : >> { %v1101_v24 = vadd.f32 %v1100_v28, %v1099_v55 }
 0x3ff   : >> { %v1102_v9 = vrot.slane %v1101_v24, 1 }
 0x401   : >> { %v1103_v31 = vadd.f32 %v1102_v9, %v1101_v24 }
 0x403   : >> { %1697 = vlog2.f32 %v1103_v31 }
 0x410   : >> { %v1698_v20 = vpop.eup %1697 }
 0x411   : >> { %v1105_v57 = vmul.f32 0.6931472, %v1698_v20 }
 0x413   : >> { %v1106_v25 = vadd.f32 %v1105_v57, %v2282_v48  ;;  %v1878_v48 = vmov (%p2308_p4), 0  }
 0x414   : > { %1699 = vset.pattern.permute.xlu0 (%p2308_p4), %v1878_v48 }
 0x415   : >> { %v1107_v35 = vsub.f32 -4.8520303, %v1106_v25 }
 0x417   : >> { %1108 = vxpose.xlu1.b32.start.end [1/1] (short) %v1107_v35, 128 }
 0x435   : > { %1700 = vset.pattern.permute.xlu1 (%p2308_p4), %v1878_v48 }
 0x493   : >> { %v1124_v37 = vpop.trf.xlu1  }
 0x494   : >> { %v2437_v25 = vmov %v1124_v37  ;;  %1142 = vperm.xlu0 (%p2308_p4), %1699, %v1124_v37  }
 0x497   : >> { %v1125_v21 = vpop.trf.xlu1  }
 0x498   : >> { %v2436_v33 = vmov %v1125_v21  ;;  %1147 = vperm.xlu0 (%p2308_p4), %1699, %v1125_v21  }
 0x49b   : >> { %v1126_v51 = vpop.trf.xlu1  }
 0x49c   : >> { %v2435_v32 = vmov %v1126_v51  ;;  %1152 = vperm.xlu1 (%p2308_p4), %1700, %v1126_v51  }
 0x49f   : >> { %v1127_v46 = vpop.trf.xlu1  }
 0x4a0   : >> { %v2434_v31 = vmov %v1127_v46  ;;  %1157 = vperm.xlu1 (%p2308_p4), %1700, %v1127_v46  }
 0x4a3   : >> { %v1128_v40 = vpop.trf.xlu1  }
 0x4a4   : >> { %v2433_v28 = vmov %v1128_v40  ;;  %1162 = vperm.xlu0 (%p2308_p4), %1699, %v1128_v40  }
 0x4a7   : >> { %v1129_v43 = vpop.trf.xlu1  }
 0x4a8   : >> { %v2432_v27 = vmov %v1129_v43  ;;  %1167 = vperm.xlu1 (%p2308_p4), %1700, %v1129_v43  }
 0x4ab   : >> { %v1130_v42 = vpop.trf.xlu1  }
 0x4ac   : >> { %v2431_v10 = vmov %v1130_v42  ;;  %1172 = vperm.xlu0 (%p2308_p4), %1699, %v1130_v42  }
 0x4af   : >> { %v1131_v1 = vpop.trf.xlu1  }
 0x4b0   : >> { %v2430_v7 = vmov %v1131_v1  ;;  %1177 = vperm.xlu1 (%p2308_p4), %1700, %v1131_v1  }
 0x4b3   : >> { %v1132_v36 = vpop.trf.xlu1  }
 0x4b4   : >> { %v2429_v26 = vmov %v1132_v36  ;;  %1182 = vperm.xlu0 (%p2308_p4), %1699, %v1132_v36  }
 0x4b7   : >> { %v1133_v41 = vpop.trf.xlu1  }
 0x4b8   : >> { %v2428_v24 = vmov %v1133_v41  ;;  %1187 = vperm.xlu1 (%p2308_p4), %1700, %v1133_v41  }
 0x4bb   : >> { %v1134_v50 = vpop.trf.xlu1  }
 0x4bc   : >> { %v2427_v22 = vmov %v1134_v50  ;;  %1192 = vperm.xlu0 (%p2308_p4), %1699, %v1134_v50  }
 0x4bf   : >> { %v1135_v34 = vpop.trf.xlu1  }
 0x4c0   : >> { %v2426_v6 = vmov %v1135_v34  ;;  %1197 = vperm.xlu1 (%p2308_p4), %1700, %v1135_v34  }
 0x4c3   : >> { %v1136_v52 = vpop.trf.xlu1  }
 0x4c4   : >> { %v2425_v20 = vmov %v1136_v52  ;;  %1202 = vperm.xlu0 (%p2308_p4), %1699, %v1136_v52  }
 0x4c7   : >> { %v1137_v56 = vpop.trf.xlu1  }
 0x4c8   : >> { %v2424_v19 = vmov %v1137_v56  ;;  %1207 = vperm.xlu1 (%p2308_p4), %1700, %v1137_v56  }
 0x4cb   : >> { %v1138_v44 = vpop.trf.xlu1  }
 0x4cc   : >> { %v2423_v17 = vmov %v1138_v44  ;;  %677 = sbr.rel (!%p2308_p4) target bundleno = 382 (0x17e), region = 68  ;;  %1212 = vperm.xlu0 (%p2308_p4), %1699, %v1138_v44  }
 0x4cf   : >> { %v1139_v55 = vpop.trf.xlu1  }
 0x4d0   : >> { %v2422_v9 = vmov %v1139_v55  ;;  %1217 = vperm.xlu1 (%p2308_p4), %1700, %v1139_v55  }
 0x50f   : > { %v1143_v54 = vpop.permute.xlu0 %1142 }
 0x510   : > { %v1220_v62 = vadd.f32 %v1143_v54, %v2245_v47 }
 0x512   : > { %v1236_v2 = vadd.f32 %v1220_v62, %v1944_v15 }
 0x513   : > { %v1148_v4 = vpop.permute.xlu0 %1147 }
 0x514   : > { %v1252_v5 = vmul.f32 1.442695, %v1236_v2  ;;  %v1221_v59 = vadd.f32 %v1148_v4, %v2245_v47 }
 0x516   : > { %v1237_v13 = vadd.f32 %v1221_v59, %v1951_v29  ;;  %1701 = vpow2.f32 %v1252_v5  ;;  %v2438_v5 = vld [vmem:[#allocation3_spill] sm:$0xff]  ;;  %v2439_v59 = vld [vmem:[#allocation2_spill] sm:$0xff] }
 0x517   : > { %v1153_v57 = vpop.permute.xlu1 %1152 }
 0x518   : > { %v1222_v61 = vadd.f32 %v1153_v57, %v2245_v47  ;;  %v1254_v26 = vmul.f32 1.442695, %v1237_v13 }
 0x51a   : > { %v1238_v45 = vadd.f32 %v1222_v61, %v1967_v49 }
 0x51b   : > { %v1158_v3 = vpop.permute.xlu1 %1157 }
 0x51c   : > { %v1223_v63 = vadd.f32 %v1158_v3, %v2245_v47  ;;  %v1256_v11 = vmul.f32 1.442695, %v1238_v45 }
 0x51e   : > { %v1239_v12 = vadd.f32 %v1223_v63, %v1979_v0  ;;  %1703 = vpow2.f32 %v1256_v11 }
 0x51f   : > { %v1163_v8 = vpop.permute.xlu0 %1162 }
 0x520   : > { %v1258_v10 = vmul.f32 1.442695, %v1239_v12  ;;  %v1224_v17 = vadd.f32 %v1163_v8, %v2245_v47 }
 0x522   : > { %1705 = vpow2.f32 %v1258_v10  ;;  %v1240_v7 = vadd.f32 %v1224_v17, %v1995_v23 }
 0x523   : > { %v1168_v16 = vpop.permute.xlu1 %1167  ;;  %1707 = vpow2.f32 %v1254_v26  ;;  %v1702_v1 = vpop.eup %1701 }
 0x524   : > { %v1225_v27 = vadd.f32 %v1168_v16, %v2245_v47  ;;  %v1260_v33 = vmul.f32 1.442695, %v1240_v7  ;;  %v1284_v61 = vmul.f32 %v1702_v1, %v1944_v15 }
 0x526   : > { %v1241_v6 = vadd.f32 %v1225_v27, %v2007_v39  ;;  %1709 = vpow2.f32 %v1260_v33 }
 0x527   : > { %v1173_v22 = vpop.permute.xlu0 %1172 }
 0x528   : > { %v1262_v19 = vmul.f32 1.442695, %v1241_v6  ;;  %v1226_v24 = vadd.f32 %v1173_v22, %v2245_v47 }
 0x52a   : > { %v1242_v31 = vadd.f32 %v1226_v24, %v2023_v60  ;;  %1711 = vpow2.f32 %v1262_v19  ;;  %v2440_v19 = vld [vmem:[#allocation4_spill] sm:$0xff] }
 0x52b   : > { %v1178_v32 = vpop.permute.xlu1 %1177  ;;  %v1704_v52 = vpop.eup %1703 }
 0x52c   : > { %v1227_v28 = vadd.f32 %v1178_v32, %v2245_v47  ;;  %v1264_v35 = vmul.f32 1.442695, %v1242_v31  ;;  %v1286_v12 = vmul.f32 %v1704_v52, %v1967_v49 }
 0x52e   : > { %v1243_v9 = vadd.f32 %v1227_v28, %v2035_v14  ;;  %1713 = vpow2.f32 %v1264_v35 }
 0x52f   : > { %v1183_v25 = vpop.permute.xlu0 %1182  ;;  %v1706_v44 = vpop.eup %1705 }
 0x530   : > { %v1228_v21 = vadd.f32 %v1183_v25, %v2245_v47  ;;  %v1266_v51 = vmul.f32 1.442695, %v1243_v9  ;;  %v1708_v54 = vpop.eup %1707  ;;  %v1287_v10 = vmul.f32 %v1706_v44, %v1979_v0 }
 0x531   : > { %v1285_v2 = vmul.f32 %v1708_v54, %v1951_v29 }
 0x532   : > { %v1244_v40 = vadd.f32 %v1228_v21, %v2051_v38  ;;  %1715 = vpow2.f32 %v1266_v51 }
 0x533   : > { %v1188_v20 = vpop.permute.xlu1 %1187  ;;  %v1300_v13 = vadd.f32 %v1285_v2, %v1284_v61  ;;  %v1710_v15 = vpop.eup %1709 }
 0x534   : > { %v1229_v37 = vadd.f32 %v1188_v20, %v2245_v47  ;;  %v1268_v36 = vmul.f32 1.442695, %v1244_v40  ;;  %v1288_v49 = vmul.f32 %v1710_v15, %v1995_v23 }
 0x535   : > { %v1301_v17 = vadd.f32 %v1300_v13, %v1286_v12 }
 0x536   : > { %v1245_v46 = vadd.f32 %v1229_v37, %v2061_v53  ;;  %1717 = vpow2.f32 %v1268_v36 }
 0x537   : > { %v1193_v42 = vpop.permute.xlu0 %1192  ;;  %v1712_v29 = vpop.eup %1711  ;;  %v1302_v22 = vadd.f32 %v1301_v17, %v1287_v10 }
 0x538   : > { %v1270_v50 = vmul.f32 1.442695, %v1245_v46  ;;  %v1230_v34 = vadd.f32 %v1193_v42, %v2245_v47  ;;  %v1289_v0 = vmul.f32 %v1712_v29, %v2007_v39 }
 0x539   : > { %v1303_v24 = vadd.f32 %v1302_v22, %v1288_v49 }
 0x53a   : > { %v1246_v55 = vadd.f32 %v1230_v34, %v2074_v18  ;;  %1719 = vpow2.f32 %v1270_v50 }
 0x53b   : > { %v1198_v43 = vpop.permute.xlu1 %1197  ;;  %v1714_v28 = vpop.eup %1713  ;;  %v1304_v25 = vadd.f32 %v1303_v24, %v1289_v0 }
 0x53c   : > { %v1231_v41 = vadd.f32 %v1198_v43, %v2245_v47  ;;  %v1272_v4 = vmul.f32 1.442695, %v1246_v55  ;;  %v1290_v35 = vmul.f32 %v1714_v28, %v2023_v60 }
 0x53e   : > { %v1247_v56 = vadd.f32 %v1231_v41, %v2082_v30  ;;  %1721 = vpow2.f32 %v1272_v4  ;;  %v1305_v21 = vadd.f32 %v1304_v25, %v1290_v35 }
 0x53f   : > { %v1203_v57 = vpop.permute.xlu0 %1202  ;;  %v1716_v20 = vpop.eup %1715 }
 0x540   : > { %v1232_v45 = vadd.f32 %v1203_v57, %v2245_v47  ;;  %v1274_v3 = vmul.f32 1.442695, %v1247_v56  ;;  %v1291_v37 = vmul.f32 %v1716_v20, %v2035_v14 }
 0x542   : > { %v1248_v11 = vadd.f32 %v1232_v45, %v2439_v59  ;;  %1723 = vpow2.f32 %v1274_v3  ;;  %v1306_v51 = vadd.f32 %v1305_v21, %v1291_v37 }
 0x543   : > { %v1208_v48 = vpop.permute.xlu1 %1207 }
 0x544   : > { %v1233_v62 = vadd.f32 %v1208_v48, %v2245_v47  ;;  %v1276_v26 = vmul.f32 1.442695, %v1248_v11 }
 0x546   : > { %v1249_v63 = vadd.f32 %v1233_v62, %v2438_v5  ;;  %1725 = vpow2.f32 %v1276_v26 }
 0x547   : > { %v1213_v8 = vpop.permute.xlu0 %1212 }
 0x548   : > { %v1278_v6 = vmul.f32 1.442695, %v1249_v63  ;;  %v1234_v7 = vadd.f32 %v1213_v8, %v2245_v47 }
 0x54a   : > { %v1250_v33 = vadd.f32 %v1234_v7, %v2440_v19  ;;  %1727 = vpow2.f32 %v1278_v6 }
 0x54b   : > { %v1218_v16 = vpop.permute.xlu1 %1217 }
 0x54c   : > { %v1235_v27 = vadd.f32 %v1218_v16, %v2245_v47  ;;  %v1280_v31 = vmul.f32 1.442695, %v1250_v33  ;;  %v1718_v47 = vpop.eup %1717 }
 0x54d   : > { %v1720_v23 = vpop.eup %1719  ;;  %v1292_v46 = vmul.f32 %v1718_v47, %v2051_v38 }
 0x54e   : > { %v1251_v32 = vadd.f32 %v1235_v27, %v2094_v58  ;;  %1729 = vpow2.f32 %v1280_v31  ;;  %v1722_v40 = vpop.eup %1721  ;;  %v1293_v39 = vmul.f32 %v1720_v23, %v2061_v53 }
 0x54f   : > { %v1307_v43 = vadd.f32 %v1306_v51, %v1292_v46  ;;  %v1724_v42 = vpop.eup %1723  ;;  %v1294_v36 = vmul.f32 %v1722_v40, %v2074_v18 }
 0x550   : > { %v1282_v9 = vmul.f32 1.442695, %v1251_v32  ;;  %v1295_v60 = vmul.f32 %v1724_v42, %v2082_v30 }
 0x551   : > { %v1308_v1 = vadd.f32 %v1307_v43, %v1293_v39 }
 0x552   : > { %1731 = vpow2.f32 %v1282_v9 }
 0x553   : > { %v1726_v41 = vpop.eup %1725  ;;  %v1309_v50 = vadd.f32 %v1308_v1, %v1294_v36 }
 0x554   : > { %v1296_v52 = vmul.f32 %v1726_v41, %v2439_v59 }
 0x555   : > { %v1310_v14 = vadd.f32 %v1309_v50, %v1295_v60 }
 0x557   : > { %v1728_v34 = vpop.eup %1727  ;;  %v1311_v38 = vadd.f32 %v1310_v14, %v1296_v52 }
 0x558   : > { %v1297_v44 = vmul.f32 %v1728_v34, %v2438_v5 }
 0x55a   : > { %v1312_v53 = vadd.f32 %v1311_v38, %v1297_v44 }
 0x55b   : > { %v1730_v56 = vpop.eup %1729 }
 0x55c   : > { %v1298_v48 = vmul.f32 %v1730_v56, %v2440_v19 }
 0x55e   : > { %v1313_v18 = vadd.f32 %v1312_v53, %v1298_v48 }
 0x55f   : > { %v1732_v55 = vpop.eup %1731 }
 0x560   : > { %v1299_v57 = vmul.f32 %v1732_v55, %v2094_v58 }
 0x562   : > { %v1314_v54 = vadd.f32 %v1313_v18, %v1299_v57 }
 0x564   : > { %v1315_v61 = vrot.slane %v1314_v54, 4 }
 0x566   : > { %v1316_v30 = vadd.f32 %v1315_v61, %v1314_v54 }
 0x568   : > { %v1317_v62 = vrot.slane %v1316_v30, 2 }
 0x56a   : > { %v1318_v45 = vadd.f32 %v1317_v62, %v1316_v30 }
 0x56c   : > { %v1319_v2 = vrot.slane %v1318_v45, 1 }
 0x56e   : > { %v1320_v3 = vadd.f32 %v1319_v2, %v1318_v45 }
 0x570   : > { %1321 = vadd.xlane.f32.xlu0 %v1320_v3 }
 0x5f9   : > { %v1322_v4 = vpop.xlane.xlu0 %1321 }
 0x5fa   : > { %v1323_v5 = vmul.f32 -6.4, %v1322_v4 }
 0x5fc   : > { %1325 = vst.msk [vmem:[%s153_s14] sm:$0x1] %vm1324_vm0, %v1323_v5 }
 0x5fd PF: > { %s12_s9 = sadd.s32 1, %s1807_s9  }
 0x5fe   : > { %p9_p5 = scmp.ge.s32.totalorder %s12_s9, 4  }
 0x600   :  { %11 = sbr.rel (!%p9_p5) target bundleno = 1 (0x1), region = 79 }

</bundles_post_ra>
